<compile_context>
chip_gen: v6e
topology: v6e:2x2x1
jax: 0.10.0
libtpu: 0.0.40
codegen_flags: <defaults>
</compile_context>

<pallas_src>
import numpy as np
import jax
import jax.numpy as jnp
from jax.experimental import pallas as pl
from jax.experimental.pallas import tpu as pltpu

_INV_SQRT2 = 0.7071067811865476
_VMEM = pltpu.MemorySpace.VMEM


# ----------------------------- Pallas kernels -----------------------------

def heads_kernel(p1_ref, gamma_ref, beta_ref, w11_ref, b11_ref,
                 poolp_ref, wpool_ref, b21_ref, up_ref,
                 featp_ref, w22_ref, b22_ref,
                 p1a_ref, enh_ref):
    """Stage 1 (whole arrays resident in VMEM, channels-first (C, M) layout).

    branch1: BatchNorm2d (training-mode batch stats, eps=1e-5) fused with the
             1x1 conv                                        -> p1a  (C, M)
    branch2: [AvgPool folded into conv2_1] -> bilinear x4 upsample (matmul with
             a precomputed kron matrix) -> sigmoid gate * conv2_2(part2)
                                                             -> enhanced (C, M)
    """
    x = p1_ref[...]                                          # (C, M)
    mean = jnp.mean(x, axis=1, keepdims=True)
    var = jnp.mean((x - mean) ** 2, axis=1, keepdims=True)
    xn = (x - mean) * jax.lax.rsqrt(var + 1e-5) * gamma_ref[...] + beta_ref[...]
    # TODO(synk): BatchNorm running_mean/running_var buffer updates (training
    # bookkeeping state) are not materialized.
    p1a = jnp.dot(w11_ref[...], xn, preferred_element_type=jnp.float32) + b11_ref[...]
    p1a_ref[...] = p1a.astype(p1a_ref.dtype)

    attn = (jnp.dot(wpool_ref[...], poolp_ref[...],
                    preferred_element_type=jnp.float32) + b21_ref[...])      # (C, N*h*w)
    attn_up = jnp.dot(attn, up_ref[...], preferred_element_type=jnp.float32)  # (C, M)
    feat = (jnp.dot(w22_ref[...], featp_ref[...],
                    preferred_element_type=jnp.float32) + b22_ref[...])      # (C, M)
    enh_ref[...] = (feat * jax.nn.sigmoid(attn_up)).astype(enh_ref.dtype)


def mid_kernel(p5p_ref, w12_ref, b12_ref,
               enhp_ref, w3f_ref, b3f_ref, part2_ref,
               p1b_ref, p2out_ref):
    """Stage 2: conv1_2 (5x5 reflect) for branch1 and conv3_final + residual
    for branch2.  Per-pixel -> gridded over the lane (pixel) axis."""
    p1b = (jnp.dot(w12_ref[...], p5p_ref[...],
                   preferred_element_type=jnp.float32) + b12_ref[...])
    p1b_ref[...] = p1b.astype(p1b_ref.dtype)

    res = (jnp.dot(w3f_ref[...], enhp_ref[...],
                   preferred_element_type=jnp.float32) + b3f_ref[...])
    p2out_ref[...] = (part2_ref[...] + res).astype(p2out_ref.dtype)


def tail_kernel(dp_ref, weff_ref, beff_ref, w2_ref, b2_ref, id_ref, out_ref):
    """Stage 3: [three dilated 3x3 convs composed with MLP-in 1x1] -> exact GELU
    -> MLP-out 1x1 -> + identity residual."""
    h = (jnp.dot(weff_ref[...], dp_ref[...],
                 preferred_element_type=jnp.float32) + beff_ref[...])        # (hidden, Mblk)
    h = 0.5 * h * (1.0 + jax.lax.erf(h * _INV_SQRT2))
    y = (jnp.dot(w2_ref[...], h, preferred_element_type=jnp.float32) + b2_ref[...])
    out_ref[...] = (y + id_ref[...]).astype(out_ref.dtype)


# ------------------------------ XLA-side glue -------------------------------

def _im2col_t(x_nhwc, ksize, dilation=1, stride=1, pad=0, pad_mode="constant"):
    """Patch extraction (pure data movement): (N,H,W,C) -> (k*k*C, N*Ho*Wo).
    K rows are ordered (ky, kx, cin), matching w.reshape(k*k*Cin, Cout)."""
    N, H, W, C = x_nhwc.shape
    if pad > 0:
        x_nhwc = jnp.pad(x_nhwc, ((0, 0), (pad, pad), (pad, pad), (0, 0)), mode=pad_mode)
    Hp, Wp = H + 2 * pad, W + 2 * pad
    Ho = (Hp - dilation * (ksize - 1) - 1) // stride + 1
    Wo = (Wp - dilation * (ksize - 1) - 1) // stride + 1
    cols = []
    for ky in range(ksize):
        for kx in range(ksize):
            oy, ox = ky * dilation, kx * dilation
            cols.append(x_nhwc[:, oy:oy + (Ho - 1) * stride + 1:stride,
                                  ox:ox + (Wo - 1) * stride + 1:stride, :])
    patches = jnp.concatenate(cols, axis=-1)                      # (N, Ho, Wo, k*k*C)
    return patches.reshape(N * Ho * Wo, ksize * ksize * C).T      # (K, M)


def _bilinear_matrix(in_size, out_size):
    # align_corners=True 1-D bilinear interpolation matrix (out_size, in_size).
    A = np.zeros((out_size, in_size), dtype=np.float32)
    if out_size == 1 or in_size == 1:
        A[:, 0] = 1.0
        return A
    scale = (in_size - 1) / (out_size - 1)
    for o in range(out_size):
        src = o * scale
        i0 = int(np.floor(src))
        i1 = min(i0 + 1, in_size - 1)
        f = src - i0
        A[o, i0] += 1.0 - f
        A[o, i1] += f
    return A


# ------------------------------- parameters --------------------------------

def init_params(key, dim):
    C = dim // 2
    hidden = 4 * dim
    ks = jax.random.split(key, 24)

    def w(k, shape, scale=0.1):
        return jax.random.normal(k, shape, jnp.float32) * scale

    return {
        "bn_gamma": jnp.ones((C,), jnp.float32),
        "bn_beta": jnp.zeros((C,), jnp.float32),
        "conv1_1_w": w(ks[0], (1, 1, C, C)), "conv1_1_b": w(ks[1], (C,)),
        "conv1_2_w": w(ks[2], (5, 5, C, C)), "conv1_2_b": w(ks[3], (C,)),
        "conv3_1_w": w(ks[4], (3, 3, C, C)), "conv3_1_b": w(ks[5], (C,)),
        "conv3_2_w": w(ks[6], (3, 3, C, C)), "conv3_2_b": w(ks[7], (C,)),
        "conv3_3_w": w(ks[8], (3, 3, C, C)), "conv3_3_b": w(ks[9], (C,)),
        "mlp_w1": w(ks[10], (3 * C, hidden)), "mlp_b1": w(ks[11], (hidden,)),
        "mlp_w2": w(ks[12], (hidden, C)), "mlp_b2": w(ks[13], (C,)),
        "conv2_1_w": w(ks[14], (3, 3, C, C)), "conv2_1_b": w(ks[15], (C,)),
        "conv2_2_w": w(ks[16], (3, 3, C, C)), "conv2_2_b": w(ks[17], (C,)),
        "conv3_final_w": w(ks[18], (3, 3, C, C)), "conv3_final_b": w(ks[19], (C,)),
    }


# --------------------------------- forward ---------------------------------

def gcam_forward(x_nchw, params):
    N, dim, H, W = x_nchw.shape
    C = dim // 2
    hidden = 4 * dim
    M = N * H * W
    dt = x_nchw.dtype

    x = jnp.transpose(x_nchw, (0, 2, 3, 1))            # NCHW -> NHWC
    part1 = x[..., :C]
    part2 = x[..., C:]
    part1_t = part1.reshape(M, C).T                    # (C, M)  pixels on lanes
    part2_t = part2.reshape(M, C).T

    def wt(w):                                          # (k,k,Cin,Cout) -> (Cout, k*k*Cin)
        k0, k1, cin, cout = w.shape
        return w.reshape(k0 * k1 * cin, cout).T

    def bt(b):
        return b.reshape(-1, 1)

    full = lambda: pl.BlockSpec(memory_space=_VMEM)

    # ------------------------------ stage 1 ------------------------------
    # AvgPool(4,4) folded into conv2_1: 12x12 stride-4 conv on zero-padded part2.
    w_pool = jnp.repeat(jnp.repeat(params["conv2_1_w"], 4, axis=0), 4, axis=1) / 16.0
    pool_patches = _im2col_t(part2, 12, stride=4, pad=4)            # (144*C, N*(H//4)*(W//4))
    feat_patches = _im2col_t(part2, 3, pad=1)                       # (9*C, M)
    h4, w4 = H // 4, W // 4
    up = np.kron(np.eye(N, dtype=np.float32),
                 np.kron(_bilinear_matrix(h4, H), _bilinear_matrix(w4, W))).T
    up = jnp.asarray(up, dt)                                        # (N*h4*w4, M)

    p1a_t, enh_t = pl.pallas_call(
        heads_kernel,
        out_shape=(jax.ShapeDtypeStruct((C, M), dt),
                   jax.ShapeDtypeStruct((C, M), dt)),
        in_specs=[full() for _ in range(12)],
        out_specs=(full(), full()),
    )(part1_t, bt(params["bn_gamma"]), bt(params["bn_beta"]),
      wt(params["conv1_1_w"]), bt(params["conv1_1_b"]),
      pool_patches, wt(w_pool), bt(params["conv2_1_b"]), up,
      feat_patches, wt(params["conv2_2_w"]), bt(params["conv2_2_b"]))

    # ------------------------------ stage 2 ------------------------------
    p1a = p1a_t.T.reshape(N, H, W, C)
    enh = enh_t.T.reshape(N, H, W, C)
    p5_patches = _im2col_t(p1a, 5, pad=2, pad_mode="reflect")       # (25*C, M)
    enh_patches = _im2col_t(enh, 3, pad=1)                          # (9*C, M)

    # 2-way pixel split so both v7x TensorCores get work (no-op on v5e/v6e).
    nsplit = 2 if M % 256 == 0 else 1
    mblk = M // nsplit
    split_spec = lambda rows: pl.BlockSpec((rows, mblk), lambda i: (0, i))
    whole_spec = lambda shape: pl.BlockSpec(shape, lambda i: (0, 0))
    cparams = pltpu.CompilerParams(dimension_semantics=("parallel",))

    p1b_t, part2_out_t = pl.pallas_call(
        mid_kernel,
        out_shape=(jax.ShapeDtypeStruct((C, M), dt),
                   jax.ShapeDtypeStruct((C, M), dt)),
        grid=(nsplit,),
        in_specs=[split_spec(25 * C), whole_spec((C, 25 * C)), whole_spec((C, 1)),
                  split_spec(9 * C), whole_spec((C, 9 * C)), whole_spec((C, 1)),
                  split_spec(C)],
        out_specs=(split_spec(C), split_spec(C)),
        compiler_params=cparams,
    )(p5_patches, wt(params["conv1_2_w"]), bt(params["conv1_2_b"]),
      enh_patches, wt(params["conv3_final_w"]), bt(params["conv3_final_b"]),
      part2_t)

    # ------------------------------ stage 3 ------------------------------
    p1b = p1b_t.T.reshape(N, H, W, C)
    dpatches = jnp.concatenate(
        [_im2col_t(p1b, 3, dilation=d, pad=d, pad_mode="reflect") for d in (1, 2, 3)],
        axis=0)                                                     # (27*C, M)

    # Pre-compose each dilated conv with its slice of the MLP's first 1x1 conv.
    w1 = params["mlp_w1"]                                           # (3C, hidden)
    w_eff = jnp.concatenate(
        [params[f"conv3_{i + 1}_w"].reshape(9 * C, C) @ w1[i * C:(i + 1) * C, :]
         for i in range(3)], axis=0)                                # (27C, hidden)
    b_eff = params["mlp_b1"] + sum(
        params[f"conv3_{i + 1}_b"] @ w1[i * C:(i + 1) * C, :] for i in range(3))

    part1_out_t = pl.pallas_call(
        tail_kernel,
        out_shape=jax.ShapeDtypeStruct((C, M), dt),
        grid=(nsplit,),
        in_specs=[split_spec(27 * C), whole_spec((hidden, 27 * C)), whole_spec((hidden, 1)),
                  whole_spec((C, hidden)), whole_spec((C, 1)), split_spec(C)],
        out_specs=split_spec(C),
        compiler_params=cparams,
    )(dpatches, w_eff.T, b_eff.reshape(hidden, 1),
      params["mlp_w2"].T, bt(params["mlp_b2"]), part1_t)

    # -------------------------- assemble NCHW output --------------------------
    out = jnp.concatenate([part1_out_t, part2_out_t], axis=0)       # (dim, M)
    return out.reshape(dim, N, H, W).transpose(1, 0, 2, 3)          # (N, dim, H, W)


# ----------------------------------- main -----------------------------------

if __name__ == "__main__":
    key = jax.random.PRNGKey(0)
    N, dim, H, W = 2, 8, 16, 16          # dim even; H, W divisible by 4
    k_x, k_p = jax.random.split(key)
    x = jax.random.normal(k_x, (N, dim, H, W), jnp.float32)
    params = init_params(k_p, dim)

    fwd = jax.jit(gcam_forward)
    y = fwd(x, params)
    jax.block_until_ready(y)
    assert y.shape == (N, dim, H, W) and y.dtype == jnp.float32
    print("KERNEL_OK")
</pallas_src>

<mosaic_0001>
module attributes {stable_mosaic.version = 11 : i64} {
  func.func @heads_kernel(%arg0: memref<4x512xf32, #tpu.memory_space<vmem>>, %arg1: memref<4x1xf32, #tpu.memory_space<vmem>>, %arg2: memref<4x1xf32, #tpu.memory_space<vmem>>, %arg3: memref<4x4xf32, #tpu.memory_space<vmem>>, %arg4: memref<4x1xf32, #tpu.memory_space<vmem>>, %arg5: memref<576x32xf32, #tpu.memory_space<vmem>>, %arg6: memref<4x576xf32, #tpu.memory_space<vmem>>, %arg7: memref<4x1xf32, #tpu.memory_space<vmem>>, %arg8: memref<32x512xf32, #tpu.memory_space<vmem>>, %arg9: memref<36x512xf32, #tpu.memory_space<vmem>>, %arg10: memref<4x36xf32, #tpu.memory_space<vmem>>, %arg11: memref<4x1xf32, #tpu.memory_space<vmem>>, %arg12: memref<4x512xf32, #tpu.memory_space<vmem>>, %arg13: memref<4x512xf32, #tpu.memory_space<vmem>>) attributes {dimension_semantics = [], scalar_prefetch = 0 : i64, scratch_operands = 0 : i64, tpu.core_type = #tpu.core_type<tc>} {
    %c0 = arith.constant 0 : index
    %c0_0 = arith.constant 0 : index
    %0 = vector.load %arg0[%c0, %c0_0] : memref<4x512xf32, #tpu.memory_space<vmem>>, vector<4x512xf32>
    %cst = arith.constant dense<0.000000e+00> : vector<4xf32>
    %1 = vector.multi_reduction <add>, %0, %cst [1] : vector<4x512xf32> to vector<4xf32>
    %2 = vector.shape_cast %1 : vector<4xf32> to vector<4x1xf32>
    %cst_1 = arith.constant 5.120000e+02 : f32
    %3 = vector.broadcast %cst_1 : f32 to vector<4x1xf32>
    %4 = arith.divf %2, %3 : vector<4x1xf32>
    %5 = vector.broadcast %4 : vector<4x1xf32> to vector<4x512xf32>
    %6 = arith.subf %0, %5 : vector<4x512xf32>
    %7 = arith.mulf %6, %6 : vector<4x512xf32>
    %cst_2 = arith.constant dense<0.000000e+00> : vector<4xf32>
    %8 = vector.multi_reduction <add>, %7, %cst_2 [1] : vector<4x512xf32> to vector<4xf32>
    %9 = vector.shape_cast %8 : vector<4xf32> to vector<4x1xf32>
    %cst_3 = arith.constant 5.120000e+02 : f32
    %10 = vector.broadcast %cst_3 : f32 to vector<4x1xf32>
    %11 = arith.divf %9, %10 : vector<4x1xf32>
    %12 = vector.broadcast %4 : vector<4x1xf32> to vector<4x512xf32>
    %13 = arith.subf %0, %12 : vector<4x512xf32>
    %cst_4 = arith.constant 9.99999974E-6 : f32
    %14 = vector.broadcast %cst_4 : f32 to vector<4x1xf32>
    %15 = arith.addf %11, %14 : vector<4x1xf32>
    %16 = math.rsqrt %15 : vector<4x1xf32>
    %17 = vector.broadcast %16 : vector<4x1xf32> to vector<4x512xf32>
    %18 = arith.mulf %13, %17 : vector<4x512xf32>
    %c0_5 = arith.constant 0 : index
    %c0_6 = arith.constant 0 : index
    %19 = vector.load %arg1[%c0_5, %c0_6] : memref<4x1xf32, #tpu.memory_space<vmem>>, vector<4x1xf32>
    %20 = vector.broadcast %19 : vector<4x1xf32> to vector<4x512xf32>
    %21 = arith.mulf %18, %20 : vector<4x512xf32>
    %c0_7 = arith.constant 0 : index
    %c0_8 = arith.constant 0 : index
    %22 = vector.load %arg2[%c0_7, %c0_8] : memref<4x1xf32, #tpu.memory_space<vmem>>, vector<4x1xf32>
    %23 = vector.broadcast %22 : vector<4x1xf32> to vector<4x512xf32>
    %24 = arith.addf %21, %23 : vector<4x512xf32>
    %c0_9 = arith.constant 0 : index
    %c0_10 = arith.constant 0 : index
    %25 = vector.load %arg3[%c0_9, %c0_10] : memref<4x4xf32, #tpu.memory_space<vmem>>, vector<4x4xf32>
    %cst_11 = arith.constant dense<0.000000e+00> : vector<4x512xf32>
    %26 = tpu.matmul %25, %24, %cst_11 {dimension_numbers = #tpu.dot_dimension_numbers<[1], [0], [0], [1], [0, 0, 1, 1], [], []>} : vector<4x4xf32>, vector<4x512xf32>, vector<4x512xf32> -> vector<4x512xf32>
    %c0_12 = arith.constant 0 : index
    %c0_13 = arith.constant 0 : index
    %27 = vector.load %arg4[%c0_12, %c0_13] : memref<4x1xf32, #tpu.memory_space<vmem>>, vector<4x1xf32>
    %28 = vector.broadcast %27 : vector<4x1xf32> to vector<4x512xf32>
    %29 = arith.addf %26, %28 : vector<4x512xf32>
    %c0_14 = arith.constant 0 : index
    %c0_15 = arith.constant 0 : index
    %30 = vector.load %arg12[%c0_14, %c0_15] : memref<4x512xf32, #tpu.memory_space<vmem>>, vector<4x512xf32>
    tpu.vector_store %arg12[%c0_14, %c0_15], %29 {strides = array<i32>} : memref<4x512xf32, #tpu.memory_space<vmem>>, vector<4x512xf32>,
    %c0_16 = arith.constant 0 : index
    %c0_17 = arith.constant 0 : index
    %31 = vector.load %arg6[%c0_16, %c0_17] : memref<4x576xf32, #tpu.memory_space<vmem>>, vector<4x576xf32>
    %c0_18 = arith.constant 0 : index
    %c0_19 = arith.constant 0 : index
    %32 = vector.load %arg5[%c0_18, %c0_19] : memref<576x32xf32, #tpu.memory_space<vmem>>, vector<576x32xf32>
    %cst_20 = arith.constant dense<0.000000e+00> : vector<4x32xf32>
    %33 = tpu.matmul %31, %32, %cst_20 {dimension_numbers = #tpu.dot_dimension_numbers<[1], [0], [0], [1], [0, 0, 1, 1], [], []>} : vector<4x576xf32>, vector<576x32xf32>, vector<4x32xf32> -> vector<4x32xf32>
    %c0_21 = arith.constant 0 : index
    %c0_22 = arith.constant 0 : index
    %34 = vector.load %arg7[%c0_21, %c0_22] : memref<4x1xf32, #tpu.memory_space<vmem>>, vector<4x1xf32>
    %35 = vector.broadcast %34 : vector<4x1xf32> to vector<4x32xf32>
    %36 = arith.addf %33, %35 : vector<4x32xf32>
    %c0_23 = arith.constant 0 : index
    %c0_24 = arith.constant 0 : index
    %37 = vector.load %arg8[%c0_23, %c0_24] : memref<32x512xf32, #tpu.memory_space<vmem>>, vector<32x512xf32>
    %cst_25 = arith.constant dense<0.000000e+00> : vector<4x512xf32>
    %38 = tpu.matmul %36, %37, %cst_25 {dimension_numbers = #tpu.dot_dimension_numbers<[1], [0], [0], [1], [0, 0, 1, 1], [], []>} : vector<4x32xf32>, vector<32x512xf32>, vector<4x512xf32> -> vector<4x512xf32>
    %c0_26 = arith.constant 0 : index
    %c0_27 = arith.constant 0 : index
    %39 = vector.load %arg10[%c0_26, %c0_27] : memref<4x36xf32, #tpu.memory_space<vmem>>, vector<4x36xf32>
    %c0_28 = arith.constant 0 : index
    %c0_29 = arith.constant 0 : index
    %40 = vector.load %arg9[%c0_28, %c0_29] : memref<36x512xf32, #tpu.memory_space<vmem>>, vector<36x512xf32>
    %cst_30 = arith.constant dense<0.000000e+00> : vector<4x512xf32>
    %41 = tpu.matmul %39, %40, %cst_30 {dimension_numbers = #tpu.dot_dimension_numbers<[1], [0], [0], [1], [0, 0, 1, 1], [], []>} : vector<4x36xf32>, vector<36x512xf32>, vector<4x512xf32> -> vector<4x512xf32>
    %c0_31 = arith.constant 0 : index
    %c0_32 = arith.constant 0 : index
    %42 = vector.load %arg11[%c0_31, %c0_32] : memref<4x1xf32, #tpu.memory_space<vmem>>, vector<4x1xf32>
    %43 = vector.broadcast %42 : vector<4x1xf32> to vector<4x512xf32>
    %44 = arith.addf %41, %43 : vector<4x512xf32>
    %45 = arith.negf %38 : vector<4x512xf32>
    %46 = math.exp %45 : vector<4x512xf32>
    %cst_33 = arith.constant 1.000000e+00 : f32
    %47 = vector.broadcast %cst_33 : f32 to vector<4x512xf32>
    %48 = arith.addf %47, %46 : vector<4x512xf32>
    %49 = arith.divf %47, %48 : vector<4x512xf32>
    %50 = arith.mulf %44, %49 : vector<4x512xf32>
    %c0_34 = arith.constant 0 : index
    %c0_35 = arith.constant 0 : index
    %51 = vector.load %arg13[%c0_34, %c0_35] : memref<4x512xf32, #tpu.memory_space<vmem>>, vector<4x512xf32>
    tpu.vector_store %arg13[%c0_34, %c0_35], %50 {strides = array<i32>} : memref<4x512xf32, #tpu.memory_space<vmem>>, vector<4x512xf32>,
    return
  }
}

module attributes {stable_mosaic.version = 11 : i64} {
  func.func @mid_kernel(%arg0: i32, %arg1: memref<100x256xf32, #tpu.memory_space<vmem>>, %arg2: memref<4x100xf32, #tpu.memory_space<vmem>>, %arg3: memref<4x1xf32, #tpu.memory_space<vmem>>, %arg4: memref<36x256xf32, #tpu.memory_space<vmem>>, %arg5: memref<4x36xf32, #tpu.memory_space<vmem>>, %arg6: memref<4x1xf32, #tpu.memory_space<vmem>>, %arg7: memref<4x256xf32, #tpu.memory_space<vmem>>, %arg8: memref<4x256xf32, #tpu.memory_space<vmem>>, %arg9: memref<4x256xf32, #tpu.memory_space<vmem>>) attributes {dimension_semantics = [#tpu.dimension_semantics<parallel>], iteration_bounds = array<i64: 2>, scalar_prefetch = 0 : i64, scratch_operands = 0 : i64, tpu.core_type = #tpu.core_type<tc>, window_params = [{transform_indices = @transform_0, window_bounds = array<i64: 100, 256>}, {pipeline_mode = #tpu.pipeline_mode<synchronous>, transform_indices = @transform_1, window_bounds = array<i64: 4, 100>}, {pipeline_mode = #tpu.pipeline_mode<synchronous>, transform_indices = @transform_2, window_bounds = array<i64: 4, 1>}, {transform_indices = @transform_3, window_bounds = array<i64: 36, 256>}, {pipeline_mode = #tpu.pipeline_mode<synchronous>, transform_indices = @transform_4, window_bounds = array<i64: 4, 36>}, {pipeline_mode = #tpu.pipeline_mode<synchronous>, transform_indices = @transform_5, window_bounds = array<i64: 4, 1>}, {transform_indices = @transform_6, window_bounds = array<i64: 4, 256>}, {transform_indices = @transform_7, window_bounds = array<i64: 4, 256>}, {transform_indices = @transform_8, window_bounds = array<i64: 4, 256>}]} {
    %c0 = arith.constant 0 : index
    %c0_0 = arith.constant 0 : index
    %0 = vector.load %arg2[%c0, %c0_0] : memref<4x100xf32, #tpu.memory_space<vmem>>, vector<4x100xf32>
    %c0_1 = arith.constant 0 : index
    %c0_2 = arith.constant 0 : index
    %1 = vector.load %arg1[%c0_1, %c0_2] : memref<100x256xf32, #tpu.memory_space<vmem>>, vector<100x256xf32>
    %cst = arith.constant dense<0.000000e+00> : vector<4x256xf32>
    %2 = tpu.matmul %0, %1, %cst {dimension_numbers = #tpu.dot_dimension_numbers<[1], [0], [0], [1], [0, 0, 1, 1], [], []>} : vector<4x100xf32>, vector<100x256xf32>, vector<4x256xf32> -> vector<4x256xf32>
    %c0_3 = arith.constant 0 : index
    %c0_4 = arith.constant 0 : index
    %3 = vector.load %arg3[%c0_3, %c0_4] : memref<4x1xf32, #tpu.memory_space<vmem>>, vector<4x1xf32>
    %4 = vector.broadcast %3 : vector<4x1xf32> to vector<4x256xf32>
    %5 = arith.addf %2, %4 : vector<4x256xf32>
    %c0_5 = arith.constant 0 : index
    %c0_6 = arith.constant 0 : index
    %6 = vector.load %arg8[%c0_5, %c0_6] : memref<4x256xf32, #tpu.memory_space<vmem>>, vector<4x256xf32>
    tpu.vector_store %arg8[%c0_5, %c0_6], %5 {strides = array<i32>} : memref<4x256xf32, #tpu.memory_space<vmem>>, vector<4x256xf32>,
    %c0_7 = arith.constant 0 : index
    %c0_8 = arith.constant 0 : index
    %7 = vector.load %arg5[%c0_7, %c0_8] : memref<4x36xf32, #tpu.memory_space<vmem>>, vector<4x36xf32>
    %c0_9 = arith.constant 0 : index
    %c0_10 = arith.constant 0 : index
    %8 = vector.load %arg4[%c0_9, %c0_10] : memref<36x256xf32, #tpu.memory_space<vmem>>, vector<36x256xf32>
    %cst_11 = arith.constant dense<0.000000e+00> : vector<4x256xf32>
    %9 = tpu.matmul %7, %8, %cst_11 {dimension_numbers = #tpu.dot_dimension_numbers<[1], [0], [0], [1], [0, 0, 1, 1], [], []>} : vector<4x36xf32>, vector<36x256xf32>, vector<4x256xf32> -> vector<4x256xf32>
    %c0_12 = arith.constant 0 : index
    %c0_13 = arith.constant 0 : index
    %10 = vector.load %arg6[%c0_12, %c0_13] : memref<4x1xf32, #tpu.memory_space<vmem>>, vector<4x1xf32>
    %11 = vector.broadcast %10 : vector<4x1xf32> to vector<4x256xf32>
    %12 = arith.addf %9, %11 : vector<4x256xf32>
    %c0_14 = arith.constant 0 : index
    %c0_15 = arith.constant 0 : index
    %13 = vector.load %arg7[%c0_14, %c0_15] : memref<4x256xf32, #tpu.memory_space<vmem>>, vector<4x256xf32>
    %14 = arith.addf %13, %12 : vector<4x256xf32>
    %c0_16 = arith.constant 0 : index
    %c0_17 = arith.constant 0 : index
    %15 = vector.load %arg9[%c0_16, %c0_17] : memref<4x256xf32, #tpu.memory_space<vmem>>, vector<4x256xf32>
    tpu.vector_store %arg9[%c0_16, %c0_17], %14 {strides = array<i32>} : memref<4x256xf32, #tpu.memory_space<vmem>>, vector<4x256xf32>,
    return
  }
  func.func @transform_0(%arg0: i32) -> (i32, i32) {
    %c0_i32 = arith.constant 0 : i32
    %c0_i32_0 = arith.constant 0 : i32
    return %c0_i32, %arg0 : i32, i32
  }
  func.func @transform_1(%arg0: i32) -> (i32, i32) {
    %c0_i32 = arith.constant 0 : i32
    %c0_i32_0 = arith.constant 0 : i32
    %c0_i32_1 = arith.constant 0 : i32
    return %c0_i32, %c0_i32_0 : i32, i32
  }
  func.func @transform_2(%arg0: i32) -> (i32, i32) {
    %c0_i32 = arith.constant 0 : i32
    %c0_i32_0 = arith.constant 0 : i32
    %c0_i32_1 = arith.constant 0 : i32
    return %c0_i32, %c0_i32_0 : i32, i32
  }
  func.func @transform_3(%arg0: i32) -> (i32, i32) {
    %c0_i32 = arith.constant 0 : i32
    %c0_i32_0 = arith.constant 0 : i32
    return %c0_i32, %arg0 : i32, i32
  }
  func.func @transform_4(%arg0: i32) -> (i32, i32) {
    %c0_i32 = arith.constant 0 : i32
    %c0_i32_0 = arith.constant 0 : i32
    %c0_i32_1 = arith.constant 0 : i32
    return %c0_i32, %c0_i32_0 : i32, i32
  }
  func.func @transform_5(%arg0: i32) -> (i32, i32) {
    %c0_i32 = arith.constant 0 : i32
    %c0_i32_0 = arith.constant 0 : i32
    %c0_i32_1 = arith.constant 0 : i32
    return %c0_i32, %c0_i32_0 : i32, i32
  }
  func.func @transform_6(%arg0: i32) -> (i32, i32) {
    %c0_i32 = arith.constant 0 : i32
    %c0_i32_0 = arith.constant 0 : i32
    return %c0_i32, %arg0 : i32, i32
  }
  func.func @transform_7(%arg0: i32) -> (i32, i32) {
    %c0_i32 = arith.constant 0 : i32
    %c0_i32_0 = arith.constant 0 : i32
    return %c0_i32, %arg0 : i32, i32
  }
  func.func @transform_8(%arg0: i32) -> (i32, i32) {
    %c0_i32 = arith.constant 0 : i32
    %c0_i32_0 = arith.constant 0 : i32
    return %c0_i32, %arg0 : i32, i32
  }
}

module attributes {stable_mosaic.version = 11 : i64} {
  func.func @tail_kernel(%arg0: i32, %arg1: memref<108x256xf32, #tpu.memory_space<vmem>>, %arg2: memref<32x108xf32, #tpu.memory_space<vmem>>, %arg3: memref<32x1xf32, #tpu.memory_space<vmem>>, %arg4: memref<4x32xf32, #tpu.memory_space<vmem>>, %arg5: memref<4x1xf32, #tpu.memory_space<vmem>>, %arg6: memref<4x256xf32, #tpu.memory_space<vmem>>, %arg7: memref<4x256xf32, #tpu.memory_space<vmem>>) attributes {dimension_semantics = [#tpu.dimension_semantics<parallel>], iteration_bounds = array<i64: 2>, scalar_prefetch = 0 : i64, scratch_operands = 0 : i64, tpu.core_type = #tpu.core_type<tc>, window_params = [{transform_indices = @transform_0, window_bounds = array<i64: 108, 256>}, {pipeline_mode = #tpu.pipeline_mode<synchronous>, transform_indices = @transform_1, window_bounds = array<i64: 32, 108>}, {pipeline_mode = #tpu.pipeline_mode<synchronous>, transform_indices = @transform_2, window_bounds = array<i64: 32, 1>}, {pipeline_mode = #tpu.pipeline_mode<synchronous>, transform_indices = @transform_3, window_bounds = array<i64: 4, 32>}, {pipeline_mode = #tpu.pipeline_mode<synchronous>, transform_indices = @transform_4, window_bounds = array<i64: 4, 1>}, {transform_indices = @transform_5, window_bounds = array<i64: 4, 256>}, {transform_indices = @transform_6, window_bounds = array<i64: 4, 256>}]} {
    %c0 = arith.constant 0 : index
    %c0_0 = arith.constant 0 : index
    %0 = vector.load %arg2[%c0, %c0_0] : memref<32x108xf32, #tpu.memory_space<vmem>>, vector<32x108xf32>
    %c0_1 = arith.constant 0 : index
    %c0_2 = arith.constant 0 : index
    %1 = vector.load %arg1[%c0_1, %c0_2] : memref<108x256xf32, #tpu.memory_space<vmem>>, vector<108x256xf32>
    %cst = arith.constant dense<0.000000e+00> : vector<32x256xf32>
    %2 = tpu.matmul %0, %1, %cst {dimension_numbers = #tpu.dot_dimension_numbers<[1], [0], [0], [1], [0, 0, 1, 1], [], []>} : vector<32x108xf32>, vector<108x256xf32>, vector<32x256xf32> -> vector<32x256xf32>
    %c0_3 = arith.constant 0 : index
    %c0_4 = arith.constant 0 : index
    %3 = vector.load %arg3[%c0_3, %c0_4] : memref<32x1xf32, #tpu.memory_space<vmem>>, vector<32x1xf32>
    %4 = vector.broadcast %3 : vector<32x1xf32> to vector<32x256xf32>
    %5 = arith.addf %2, %4 : vector<32x256xf32>
    %cst_5 = arith.constant 5.000000e-01 : f32
    %6 = vector.broadcast %cst_5 : f32 to vector<32x256xf32>
    %7 = arith.mulf %6, %5 : vector<32x256xf32>
    %cst_6 = arith.constant 0.707106769 : f32
    %8 = vector.broadcast %cst_6 : f32 to vector<32x256xf32>
    %9 = arith.mulf %5, %8 : vector<32x256xf32>
    %10 = math.erf %9 : vector<32x256xf32>
    %cst_7 = arith.constant 1.000000e+00 : f32
    %11 = vector.broadcast %cst_7 : f32 to vector<32x256xf32>
    %12 = arith.addf %11, %10 : vector<32x256xf32>
    %13 = arith.mulf %7, %12 : vector<32x256xf32>
    %c0_8 = arith.constant 0 : index
    %c0_9 = arith.constant 0 : index
    %14 = vector.load %arg4[%c0_8, %c0_9] : memref<4x32xf32, #tpu.memory_space<vmem>>, vector<4x32xf32>
    %cst_10 = arith.constant dense<0.000000e+00> : vector<4x256xf32>
    %15 = tpu.matmul %14, %13, %cst_10 {dimension_numbers = #tpu.dot_dimension_numbers<[1], [0], [0], [1], [0, 0, 1, 1], [], []>} : vector<4x32xf32>, vector<32x256xf32>, vector<4x256xf32> -> vector<4x256xf32>
    %c0_11 = arith.constant 0 : index
    %c0_12 = arith.constant 0 : index
    %16 = vector.load %arg5[%c0_11, %c0_12] : memref<4x1xf32, #tpu.memory_space<vmem>>, vector<4x1xf32>
    %17 = vector.broadcast %16 : vector<4x1xf32> to vector<4x256xf32>
    %18 = arith.addf %15, %17 : vector<4x256xf32>
    %c0_13 = arith.constant 0 : index
    %c0_14 = arith.constant 0 : index
    %19 = vector.load %arg6[%c0_13, %c0_14] : memref<4x256xf32, #tpu.memory_space<vmem>>, vector<4x256xf32>
    %20 = arith.addf %18, %19 : vector<4x256xf32>
    %c0_15 = arith.constant 0 : index
    %c0_16 = arith.constant 0 : index
    %21 = vector.load %arg7[%c0_15, %c0_16] : memref<4x256xf32, #tpu.memory_space<vmem>>, vector<4x256xf32>
    tpu.vector_store %arg7[%c0_15, %c0_16], %20 {strides = array<i32>} : memref<4x256xf32, #tpu.memory_space<vmem>>, vector<4x256xf32>,
    return
  }
  func.func @transform_0(%arg0: i32) -> (i32, i32) {
    %c0_i32 = arith.constant 0 : i32
    %c0_i32_0 = arith.constant 0 : i32
    return %c0_i32, %arg0 : i32, i32
  }
  func.func @transform_1(%arg0: i32) -> (i32, i32) {
    %c0_i32 = arith.constant 0 : i32
    %c0_i32_0 = arith.constant 0 : i32
    %c0_i32_1 = arith.constant 0 : i32
    return %c0_i32, %c0_i32_0 : i32, i32
  }
  func.func @transform_2(%arg0: i32) -> (i32, i32) {
    %c0_i32 = arith.constant 0 : i32
    %c0_i32_0 = arith.constant 0 : i32
    %c0_i32_1 = arith.constant 0 : i32
    return %c0_i32, %c0_i32_0 : i32, i32
  }
  func.func @transform_3(%arg0: i32) -> (i32, i32) {
    %c0_i32 = arith.constant 0 : i32
    %c0_i32_0 = arith.constant 0 : i32
    %c0_i32_1 = arith.constant 0 : i32
    return %c0_i32, %c0_i32_0 : i32, i32
  }
  func.func @transform_4(%arg0: i32) -> (i32, i32) {
    %c0_i32 = arith.constant 0 : i32
    %c0_i32_0 = arith.constant 0 : i32
    %c0_i32_1 = arith.constant 0 : i32
    return %c0_i32, %c0_i32_0 : i32, i32
  }
  func.func @transform_5(%arg0: i32) -> (i32, i32) {
    %c0_i32 = arith.constant 0 : i32
    %c0_i32_0 = arith.constant 0 : i32
    return %c0_i32, %arg0 : i32, i32
  }
  func.func @transform_6(%arg0: i32) -> (i32, i32) {
    %c0_i32 = arith.constant 0 : i32
    %c0_i32_0 = arith.constant 0 : i32
    return %c0_i32, %arg0 : i32, i32
  }
}

</mosaic_0001>

<bundles_post_ra>
// kernel: gcam_forward.3
= control target key start
LH: loop header
LB: loop body
LE: loop exit
PB: predicated region body
PF: predicated region fallthrough
CT: control target
= control target key end

     0   :  { %vm51_vm0 = vcmask 1043456   ;;  %v1149_v11 = vmov 0   ;;  %v1150_v16 = vmov 839922192   ;;  %v67_v18 = vlaneseq  ;;  %s1640_s0 = inlined_call_operand.vmem [shape: f32[4,512], index: 0, kind: input, shape index: {}]   ;;  %s1641_s1 = inlined_call_operand.vmem [shape: f32[4,1], index: 1, kind: input, shape index: {}]   ;;  %s1642_s2 = inlined_call_operand.vmem [shape: f32[4,1], index: 2, kind: input, shape index: {}]   ;;  %s1643_s11 = inlined_call_operand.vmem [shape: f32[4,1], index: 11, kind: input, shape index: {}]   ;;  %s1644_s4 = inlined_call_operand.vmem [shape: f32[4,1], index: 4, kind: input, shape index: {}]   ;;  %s1645_s7 = inlined_call_operand.vmem [shape: f32[4,1], index: 7, kind: input, shape index: {}]   ;;  %s1646_s3 = inlined_call_operand.vmem [shape: f32[4,4], index: 3, kind: input, shape index: {}]   ;;  %s1647_s5 = inlined_call_operand.vmem [shape: f32[576,32], index: 5, kind: input, shape index: {}]   ;;  %s1648_s6 = inlined_call_operand.vmem [shape: f32[4,576], index: 6, kind: input, shape index: {}]   ;;  %s1649_s9 = inlined_call_operand.vmem [shape: f32[36,512], index: 9, kind: input, shape index: {}]   ;;  %s1650_s10 = inlined_call_operand.vmem [shape: f32[4,36], index: 10, kind: input, shape index: {}]   ;;  %s1651_s8 = inlined_call_operand.vmem [shape: f32[32,512], index: 8, kind: input, shape index: {}]   ;;  %s1652_s12 = inlined_call_operand.vmem [shape: f32[4,512], index: 12, kind: output, shape index: {0}]   ;;  %s1653_s13 = inlined_call_operand.vmem [shape: f32[4,512], index: 13, kind: output, shape index: {1}]  }
   0x1   :  { %v43_v0 = vld [vmem:[%s1640_s0] sm:$0xff]  ;;  %v44_v1 = vld [vmem:[%s1640_s0 + $0x8] sm:$0xff]  ;;  %1125 = vset.pattern.permute.xlu1 %v1149_v11  ;;  %1126 = vset.pattern.permute.xlu0 %v1149_v11  ;;  %v65_v17 = vunpack.c.l.s4 %v1150_v16  ;;  %v1151_v38 = vmov 0.0   ;;  %vm146_vm1 = vcmask 31744   ;;  %v344_v58 = vld [vmem:[%s1647_s5 + $0xf8] sm:$0xff]  ;;  %vm1152_vm2 = vmmov 0  }
   0x2   :  { %v47_v2 = vcombine.high %v43_v0, %v43_v0  ;;  %v48_v3 = vcombine.high %v44_v1, %v44_v1  ;;  %v52_v4 = vsel %vm51_vm0, %v43_v0, 0.0  ;;  %v55_v6 = vsel %vm51_vm0, %v44_v1, 0.0  ;;  %v105_v12 = vld [vmem:[%s1641_s1] sm:$0xf]  ;;  %222 = vmatprep.mubr.f32.mxu0 %v1151_v38  ;;  %293 = vmatprep.mubr.f32.mxu1 %v1151_v38  ;;  %v376_v59 = vld [vmem:[%s1647_s5 + $0x1f8] sm:$0xff]  ;;  %v343_v62 = vld [vmem:[%s1647_s5 + $0xf0] sm:$0xff] }
   0x3   :  { %108 = vperm.xlu1 %1125, %v105_v12   ;;  %v120_v13 = vld [vmem:[%s1642_s2] sm:$0xf]  ;;  %v66_v19 = vunpack.c.0.s8 %v65_v17  ;;  %v68_v20 = vshrl.u32 %v67_v18, 7  ;;  %v328_v60 = vld [vmem:[%s1647_s5 + $0x78] sm:$0xff]  ;;  %v375_v63 = vld [vmem:[%s1647_s5 + $0x1f0] sm:$0xff]  ;;  %vm398_vm3 = vcmask 523264  }
   0x4   :  { %v53_v5 = vsel %vm51_vm0, %v47_v2, 0.0  ;;  %v57_v8 = vsel %vm51_vm0, %v48_v3, 0.0  ;;  %v794_v14 = vld [vmem:[%s1643_s11] sm:$0xf]  ;;  %v360_v61 = vld [vmem:[%s1647_s5 + $0x178] sm:$0xff]  ;;  %v342_v2 = vld [vmem:[%s1647_s5 + $0xe8] sm:$0xff] }
   0x5   :  { %v54_v7 = vadd.f32 %v53_v5, %v52_v4  ;;  %v136_v15 = vld [vmem:[%s1644_s4] sm:$0xf]  ;;  %v69_v21 = vsub.s32 %v66_v19, %v68_v20  ;;  %v374_v3 = vld [vmem:[%s1647_s5 + $0x1e8] sm:$0xff]  ;;  %v372_v11 = vld [vmem:[%s1647_s5 + $0x1d8] sm:$0xff]  ;;  %vm800_vm4 = vcmask 293888   ;;  %vm627_vm5 = vcmask 261120  }
   0x6   :  { %v385_v39 = vld [vmem:[%s1645_s7] sm:$0xf]  ;;  %v326_v4 = vld [vmem:[%s1647_s5 + $0x68] sm:$0xff]  ;;  %v324_v12 = vld [vmem:[%s1647_s5 + $0x58] sm:$0xff] }
   0x7   :  { %v56_v9 = vadd.f32 %v55_v6, %v54_v7  ;;  %123 = vperm.xlu1 %1125, %v120_v13   ;;  %v135_v57 = vld [vmem:[%s1646_s3] sm:$0xf]  ;;  %v358_v5 = vld [vmem:[%s1647_s5 + $0x168] sm:$0xff]  ;;  %v356_v13 = vld [vmem:[%s1647_s5 + $0x158] sm:$0xff] }
   0x8   :  { %v341_v6 = vld [vmem:[%s1647_s5 + $0xe0] sm:$0xff]  ;;  %v323_v16 = vld [vmem:[%s1647_s5 + $0x50] sm:$0xff]  ;;  %v338_v18 = vld [vmem:[%s1647_s5 + $0xc8] sm:$0xff] }
   0x9   :  { %v58_v10 = vadd.f32 %v57_v8, %v56_v9  ;;  %v373_v7 = vld [vmem:[%s1647_s5 + $0x1e0] sm:$0xff]  ;;  %v355_v17 = vld [vmem:[%s1647_s5 + $0x150] sm:$0xff]  ;;  %v370_v19 = vld [vmem:[%s1647_s5 + $0x1c8] sm:$0xff] }
   0xa   :  { %v325_v8 = vld [vmem:[%s1647_s5 + $0x60] sm:$0xff]  ;;  %v322_v20 = vld [vmem:[%s1647_s5 + $0x48] sm:$0xff] }
   0xb   :  { %59 = vadd.xlane.f32.xlu0 %v58_v10  ;;  %797 = vperm.xlu1 %1125, %v794_v14   ;;  %v357_v9 = vld [vmem:[%s1647_s5 + $0x160] sm:$0xff]  ;;  %v340_v10 = vld [vmem:[%s1647_s5 + $0xd8] sm:$0xff]  ;;  %v339_v14 = vld [vmem:[%s1647_s5 + $0xd0] sm:$0xff] }
   0xf   :  { %139 = vperm.xlu1 %1125, %v136_v15   ;;  %v371_v15 = vld [vmem:[%s1647_s5 + $0x1d0] sm:$0xff] }
  0x7e   :  { %v109_v43 = vpop.permute.xlu1 %108 }
  0x7f   :  { %v116_v48 = vrot.slane %v109_v43, %v69_v21  ;;  %v332_v43 = vld [vmem:[%s1647_s5 + $0x98] sm:$0xff] }
  0x82   :  { %v124_v49 = vpop.permute.xlu1 %123 }
  0x83   :  { %v131_v52 = vrot.slane %v124_v49, %v69_v21  ;;  %v363_v49 = vld [vmem:[%s1647_s5 + $0x190] sm:$0xff] }
  0x94   :  { %v60_v22 = vpop.xlane.xlu0 %59 }
  0x95   :  { %v62_v23 = vmul.f32 0.001953125, %v60_v22  ;;  %v337_v22 = vld [vmem:[%s1647_s5 + $0xc0] sm:$0xff] }
  0x97   :  { %v70_v24 = vrot.slane %v62_v23, %v69_v21  ;;  %v369_v23 = vld [vmem:[%s1647_s5 + $0x1c0] sm:$0xff] }
  0x99   :  { %v72_v25 = vsub.f32 %v43_v0, %v70_v24  ;;  %v73_v26 = vsub.f32 %v44_v1, %v70_v24  ;;  %v327_v0 = vld [vmem:[%s1647_s5 + $0x70] sm:$0xff]  ;;  %v321_v24 = vld [vmem:[%s1647_s5 + $0x40] sm:$0xff] }
  0x9a   :  { %v359_v1 = vld [vmem:[%s1647_s5 + $0x170] sm:$0xff] }
  0x9b   :  { %v74_v27 = vmul.f32 %v72_v25, %v72_v25  ;;  %v75_v28 = vmul.f32 %v73_v26, %v73_v26 }
  0x9d   :  { %v78_v29 = vcombine.high %v74_v27, %v74_v27  ;;  %v79_v30 = vcombine.high %v75_v28, %v75_v28  ;;  %v82_v31 = vsel %vm51_vm0, %v74_v27, 0.0  ;;  %v85_v34 = vsel %vm51_vm0, %v75_v28, 0.0  ;;  %v368_v27 = vld [vmem:[%s1647_s5 + $0x1b8] sm:$0xff] }
  0x9e   :  { %v320_v28 = vld [vmem:[%s1647_s5 + $0x38] sm:$0xff] }
  0x9f   :  { %v83_v32 = vsel %vm51_vm0, %v78_v29, 0.0  ;;  %v87_v36 = vsel %vm51_vm0, %v79_v30, 0.0  ;;  %v352_v29 = vld [vmem:[%s1647_s5 + $0x138] sm:$0xff]  ;;  %v335_v30 = vld [vmem:[%s1647_s5 + $0xb0] sm:$0xff] }
  0xa0   :  { %v84_v33 = vadd.f32 %v83_v32, %v82_v31  ;;  %v367_v31 = vld [vmem:[%s1647_s5 + $0x1b0] sm:$0xff] }
  0xa1   :  { %v319_v32 = vld [vmem:[%s1647_s5 + $0x30] sm:$0xff] }
  0xa2   :  { %v86_v35 = vadd.f32 %v85_v34, %v84_v33  ;;  %v351_v33 = vld [vmem:[%s1647_s5 + $0x130] sm:$0xff]  ;;  %v334_v34 = vld [vmem:[%s1647_s5 + $0xa8] sm:$0xff] }
  0xa4   :  { %v88_v37 = vadd.f32 %v87_v36, %v86_v35  ;;  %v366_v35 = vld [vmem:[%s1647_s5 + $0x1a8] sm:$0xff] }
  0xa5   :  { %v318_v36 = vld [vmem:[%s1647_s5 + $0x28] sm:$0xff] }
  0xa6   :  { %89 = vadd.xlane.f32.xlu0 %v88_v37  ;;  %v350_v37 = vld [vmem:[%s1647_s5 + $0x128] sm:$0xff] }
  0xbc   :  { %388 = vperm.xlu0 %1126, %v385_v39   ;;  %v333_v39 = vld [vmem:[%s1647_s5 + $0xa0] sm:$0xff] }
 0x12f   :  { %v90_v40 = vpop.xlane.xlu0 %89 }
 0x130   :  { %v91_v41 = vmul.f32 0.001953125, %v90_v40  ;;  %v365_v40 = vld [vmem:[%s1647_s5 + $0x1a0] sm:$0xff] }
 0x132   :  { %v92_v42 = vadd.f32 1e-05, %v91_v41  ;;  %v317_v41 = vld [vmem:[%s1647_s5 + $0x20] sm:$0xff] }
 0x134   :  { %1131 = vrsqrt.f32 %v92_v42  ;;  %v349_v42 = vld [vmem:[%s1647_s5 + $0x120] sm:$0xff] }
 0x141   :  { %v1132_v44 = vpop.eup %1131 }
 0x142   :  { %v101_v45 = vrot.slane %v1132_v44, %v69_v21  ;;  %v354_v21 = vld [vmem:[%s1647_s5 + $0x148] sm:$0xff]  ;;  %v364_v44 = vld [vmem:[%s1647_s5 + $0x198] sm:$0xff] }
 0x144   :  { %v103_v46 = vmul.f32 %v101_v45, %v72_v25  ;;  %v104_v47 = vmul.f32 %v101_v45, %v73_v26  ;;  %v353_v25 = vld [vmem:[%s1647_s5 + $0x140] sm:$0xff]  ;;  %v336_v26 = vld [vmem:[%s1647_s5 + $0xb8] sm:$0xff] }
 0x145   :  { %v316_v45 = vld [vmem:[%s1647_s5 + $0x18] sm:$0xff] }
 0x146   :  { %v118_v50 = vmul.f32 %v116_v48, %v103_v46  ;;  %v119_v51 = vmul.f32 %v116_v48, %v104_v47  ;;  %v348_v46 = vld [vmem:[%s1647_s5 + $0x118] sm:$0xff]  ;;  %v310_v47 = vld [vmem:[%s1648_s6] sm:$0xff]  ;;  %v331_v48 = vld [vmem:[%s1647_s5 + $0x90] sm:$0xff] }
 0x148   :  { %v133_v53 = vadd.f32 %v131_v52, %v118_v50  ;;  %v134_v54 = vadd.f32 %v131_v52, %v119_v51  ;;  %v315_v50 = vld [vmem:[%s1647_s5 + $0x10] sm:$0xff]  ;;  %v330_v52 = vld [vmem:[%s1647_s5 + $0x88] sm:$0xff] }
 0x149   :  { %v347_v51 = vld [vmem:[%s1647_s5 + $0x110] sm:$0xff] }
 0x14a   :  { %v144_v55 = vcombine.high %v133_v53, %v133_v53  ;;  %v145_v56 = vcombine.high %v134_v54, %v134_v54 }
 0x14c   :  { %1004 = vmatprep.subr.msk.mxu0 %vm51_vm0, %v144_v55  ;;  %1007 = vmatprep.subr.msk.mxu1 %vm51_vm0, %v145_v56  ;;  %v314_v55 = vld [vmem:[%s1647_s5 + $0x8] sm:$0xff] }
 0x14d   :  { %1005 = vmatpush1.msk.msra.mxu0 %vm51_vm0, %v133_v53  ;;  %1008 = vmatpush1.msk.msra.mxu1 %vm51_vm0, %v134_v54  ;;  %v362_v53 = vld [vmem:[%s1647_s5 + $0x188] sm:$0xff]  ;;  %v394_v54 = vcombine.high %v310_v47, %v310_v47 }
 0x14e   :  { %1006 = vmatmul.mubr.msk.f32.vlgmr.msra.gmra.mxu0 %vm146_vm1, %v135_v57  ;;  %1009 = vmatmul.mubr.msk.f32.vlgmr.msra.gmra.mxu1 %vm146_vm1, %v135_v57  ;;  %v311_v56 = vld [vmem:[%s1648_s6 + $0x8] sm:$0xff]  ;;  %v329_v57 = vld [vmem:[%s1647_s5 + $0x80] sm:$0xff] }
 0x14f   :  { %1023 = vmatprep.subr.mxu0 %v344_v58  ;;  %1058 = vmatprep.subr.mxu1 %v376_v59  ;;  %v346_v58 = vld [vmem:[%s1647_s5 + $0x108] sm:$0xff]  ;;  %v313_v59 = vld [vmem:[%s1647_s5] sm:$0xff] }
 0x150   :  { %1024 = vmatpush3.msra.mxu0 %v328_v60  ;;  %1059 = vmatpush3.msra.mxu1 %v360_v61  ;;  %v361_v60 = vld [vmem:[%s1647_s5 + $0x180] sm:$0xff]  ;;  %v395_v61 = vcombine.high %v311_v56, %v311_v56 }
 0x151   :  { %1025 = vmatprep.subr.mxu0 %v343_v62  ;;  %1060 = vmatprep.subr.mxu1 %v375_v63  ;;  %v345_v62 = vld [vmem:[%s1647_s5 + $0x100] sm:$0xff]  ;;  %v384_v63 = vld [vmem:[%s1647_s5 + $0x238] sm:$0xff] }
 0x152   :  { %1026 = vmatpush3.msra.mxu0 %v327_v0  ;;  %1061 = vmatpush3.msra.mxu1 %v359_v1  ;;  %v383_v0 = vld [vmem:[%s1647_s5 + $0x230] sm:$0xff]  ;;  %v382_v1 = vld [vmem:[%s1647_s5 + $0x228] sm:$0xff] }
 0x153   :  { %1027 = vmatprep.subr.mxu0 %v342_v2  ;;  %1062 = vmatprep.subr.mxu1 %v374_v3  ;;  %v381_v2 = vld [vmem:[%s1647_s5 + $0x220] sm:$0xff]  ;;  %v380_v3 = vld [vmem:[%s1647_s5 + $0x218] sm:$0xff] }
 0x154   :  { %1028 = vmatpush3.msra.mxu0 %v326_v4  ;;  %1063 = vmatpush3.msra.mxu1 %v358_v5  ;;  %v379_v4 = vld [vmem:[%s1647_s5 + $0x210] sm:$0xff]  ;;  %v378_v5 = vld [vmem:[%s1647_s5 + $0x208] sm:$0xff] }
 0x155   :  { %1029 = vmatprep.subr.mxu0 %v341_v6  ;;  %1064 = vmatprep.subr.mxu1 %v373_v7  ;;  %v377_v6 = vld [vmem:[%s1647_s5 + $0x200] sm:$0xff]  ;;  %v312_v7 = vld [vmem:[%s1648_s6 + $0x10] sm:$0xf] }
 0x156   :  { %1030 = vmatpush3.msra.mxu0 %v325_v8  ;;  %1065 = vmatpush3.msra.mxu1 %v357_v9  ;;  %v791_v8 = vld [vmem:[%s1649_s9 + $0x88] sm:$0xf]  ;;  %v790_v9 = vld [vmem:[%s1649_s9 + $0x80] sm:$0xf] }
 0x157   :  { %1031 = vmatprep.subr.mxu0 %v340_v10  ;;  %1066 = vmatprep.subr.mxu1 %v372_v11  ;;  %v787_v10 = vld [vmem:[%s1649_s9 + $0x68] sm:$0xff]  ;;  %v786_v11 = vld [vmem:[%s1649_s9 + $0x60] sm:$0xff] }
 0x158   :  { %1032 = vmatpush3.msra.mxu0 %v324_v12  ;;  %1067 = vmatpush3.msra.mxu1 %v356_v13  ;;  %v783_v12 = vld [vmem:[%s1649_s9 + $0x48] sm:$0xff]  ;;  %v782_v13 = vld [vmem:[%s1649_s9 + $0x40] sm:$0xff] }
 0x159   :  { %1033 = vmatprep.subr.mxu0 %v339_v14  ;;  %1068 = vmatprep.subr.mxu1 %v371_v15  ;;  %v779_v14 = vld [vmem:[%s1649_s9 + $0x28] sm:$0xff]  ;;  %v778_v15 = vld [vmem:[%s1649_s9 + $0x20] sm:$0xff] }
 0x15a   :  { %1034 = vmatpush3.msra.mxu0 %v323_v16  ;;  %1069 = vmatpush3.msra.mxu1 %v355_v17  ;;  %v775_v16 = vld [vmem:[%s1649_s9 + $0x8] sm:$0xff]  ;;  %v774_v17 = vld [vmem:[%s1649_s9] sm:$0xff] }
 0x15b   :  { %1035 = vmatprep.subr.mxu0 %v338_v18  ;;  %1070 = vmatprep.subr.mxu1 %v370_v19  ;;  %v1532_v18 = vld [vmem:[%s1650_s10] sm:$0xf]  ;;  %v624_v19 = vld [vmem:[%s1651_s8 + $0x68] sm:$0xff] }
 0x15c   :  { %1036 = vmatpush3.msra.mxu0 %v322_v20  ;;  %1071 = vmatpush3.msra.mxu1 %v354_v21  ;;  %v623_v20 = vld [vmem:[%s1651_s8 + $0x60] sm:$0xff]  ;;  %v620_v21 = vld [vmem:[%s1651_s8 + $0x48] sm:$0xff] }
 0x15d   :  { %1037 = vmatprep.subr.mxu0 %v337_v22  ;;  %1072 = vmatprep.subr.mxu1 %v369_v23  ;;  %v619_v22 = vld [vmem:[%s1651_s8 + $0x40] sm:$0xff]  ;;  %v616_v23 = vld [vmem:[%s1651_s8 + $0x28] sm:$0xff] }
 0x15e   :  { %1038 = vmatpush3.msra.mxu0 %v321_v24  ;;  %1073 = vmatpush3.msra.mxu1 %v353_v25  ;;  %v615_v24 = vld [vmem:[%s1651_s8 + $0x20] sm:$0xff]  ;;  %v612_v25 = vld [vmem:[%s1651_s8 + $0x8] sm:$0xff] }
 0x15f   :  { %1039 = vmatprep.subr.mxu0 %v336_v26  ;;  %1074 = vmatprep.subr.mxu1 %v368_v27  ;;  %v611_v26 = vld [vmem:[%s1651_s8] sm:$0xff]  ;;  %v626_v27 = vld [vmem:[%s1651_s8 + $0x78] sm:$0xff] }
 0x160   :  { %1040 = vmatpush3.msra.mxu0 %v320_v28  ;;  %1075 = vmatpush3.msra.mxu1 %v352_v29  ;;  %v1563_v28 = vpop.permute.xlu1 %797 }
 0x161   :  { %1041 = vmatprep.subr.mxu0 %v335_v30  ;;  %1076 = vmatprep.subr.mxu1 %v367_v31 }
 0x162   :  { %1042 = vmatpush3.msra.mxu0 %v319_v32  ;;  %1077 = vmatpush3.msra.mxu1 %v351_v33 }
 0x163   :  { %1043 = vmatprep.subr.mxu0 %v334_v34  ;;  %1078 = vmatprep.subr.mxu1 %v366_v35 }
 0x164   :  { %1044 = vmatpush3.msra.mxu0 %v318_v36  ;;  %1079 = vmatpush3.msra.mxu1 %v350_v37  ;;  %v140_v31 = vpop.permute.xlu1 %139 }
 0x165   :  { %1045 = vmatprep.subr.mxu0 %v333_v39  ;;  %1080 = vmatprep.subr.mxu1 %v365_v40 }
 0x166   :  { %1046 = vmatpush3.msra.mxu0 %v317_v41  ;;  %1081 = vmatpush3.msra.mxu1 %v349_v42 }
 0x167   :  { %1047 = vmatprep.subr.mxu0 %v332_v43  ;;  %1082 = vmatprep.subr.mxu1 %v364_v44 }
 0x168   :  { %1048 = vmatpush3.msra.mxu0 %v316_v45  ;;  %1083 = vmatpush3.msra.mxu1 %v348_v46  ;;  %v389_v46 = vpop.permute.xlu0 %388 }
 0x169   :  { %1049 = vmatprep.subr.mxu0 %v331_v48  ;;  %1084 = vmatprep.subr.mxu1 %v363_v49 }
 0x16a   :  { %1050 = vmatpush3.msra.mxu0 %v315_v50  ;;  %1085 = vmatpush3.msra.mxu1 %v347_v51 }
 0x16b   :  { %1051 = vmatprep.subr.mxu0 %v330_v52  ;;  %1086 = vmatprep.subr.mxu1 %v362_v53  ;;  %v625_v52 = vld [vmem:[%s1651_s8 + $0x70] sm:$0xff] }
 0x16c   :  { %1052 = vmatpush3.msra.mxu0 %v314_v55  ;;  %465 = vmatprep.mubr.f32.mxu0 %v394_v54  ;;  %v622_v54 = vld [vmem:[%s1651_s8 + $0x58] sm:$0xff]  ;;  %v621_v55 = vld [vmem:[%s1651_s8 + $0x50] sm:$0xff] }
 0x16d   :  { %1053 = vmatprep.subr.mxu0 %v329_v57  ;;  %1087 = vmatpush3.msra.mxu1 %v346_v58  ;;  %v617_v57 = vld [vmem:[%s1651_s8 + $0x30] sm:$0xff]  ;;  %v614_v58 = vld [vmem:[%s1651_s8 + $0x18] sm:$0xff] }
 0x16e   :  { %1054 = vmatpush3.msra.mxu0 %v313_v59  ;;  %1088 = vmatprep.subr.mxu1 %v361_v60  ;;  %v613_v59 = vld [vmem:[%s1651_s8 + $0x10] sm:$0xff]  ;;  %v793_v60 = vld [vmem:[%s1649_s9 + $0x98] sm:$0xf] }
 0x16f   :  { %466 = vmatmul.mubr.f32.vlgmr.msra.gmra.mxu0 %v310_v47  ;;  %1102 = vmatprep.subr.mxu0 %v1151_v38 }
 0x170   :  { %1089 = vmatpush3.msra.mxu1 %v345_v62  ;;  %535 = vmatprep.mubr.f32.mxu1 %v395_v61  ;;  %v792_v61 = vld [vmem:[%s1649_s9 + $0x90] sm:$0xf]  ;;  %v789_v62 = vld [vmem:[%s1649_s9 + $0x78] sm:$0xff] }
 0x171   :  { %1103 = vmatpush3.msra.mxu0 %v384_v63  ;;  %536 = vmatmul.mubr.f32.vlgmr.msra.gmra.mxu1 %v311_v56  ;;  %v618_v56 = vld [vmem:[%s1651_s8 + $0x38] sm:$0xff]  ;;  %v788_v63 = vld [vmem:[%s1649_s9 + $0x70] sm:$0xff] }
 0x172   :  { %1104 = vmatprep.subr.mxu0 %v1151_v38  ;;  %1118 = vmatprep.mubr.msk.f32.mxu0 %vm1152_vm2, %v1151_v38 }
 0x173   :  { %1105 = vmatpush3.msra.mxu0 %v383_v0  ;;  %695 = vmatprep.mubr.f32.mxu1 %v1151_v38  ;;  %v785_v0 = vld [vmem:[%s1649_s9 + $0x58] sm:$0xff] }
 0x174   :  { %1106 = vmatprep.subr.mxu0 %v1151_v38  ;;  %655 = vmatprep.subr.mxu1 %v624_v19 }
 0x175   :  { %1107 = vmatpush3.msra.mxu0 %v382_v1  ;;  %656 = vmatpush1.msra.mxu1 %v623_v20  ;;  %v784_v1 = vld [vmem:[%s1649_s9 + $0x50] sm:$0xff] }
 0x176   :  { %1108 = vmatprep.subr.mxu0 %v1151_v38  ;;  %657 = vmatprep.subr.mxu1 %v620_v21 }
 0x177   :  { %1109 = vmatpush3.msra.mxu0 %v381_v2  ;;  %658 = vmatpush1.msra.mxu1 %v619_v22  ;;  %v781_v2 = vld [vmem:[%s1649_s9 + $0x38] sm:$0xff] }
 0x178   :  { %1110 = vmatprep.subr.mxu0 %v1151_v38  ;;  %659 = vmatprep.subr.mxu1 %v616_v23 }
 0x179   :  { %1111 = vmatpush3.msra.mxu0 %v380_v3  ;;  %660 = vmatpush1.msra.mxu1 %v615_v24  ;;  %v780_v3 = vld [vmem:[%s1649_s9 + $0x30] sm:$0xff] }
 0x17a   :  { %1112 = vmatprep.subr.mxu0 %v1151_v38  ;;  %661 = vmatprep.subr.mxu1 %v612_v25 }
 0x17b   :  { %1113 = vmatpush3.msra.mxu0 %v379_v4  ;;  %662 = vmatpush1.msra.mxu1 %v611_v26  ;;  %v776_v4 = vld [vmem:[%s1649_s9 + $0x10] sm:$0xff] }
 0x17c   :  { %1114 = vmatprep.subr.mxu0 %v1151_v38  ;;  %726 = vmatprep.subr.mxu1 %v626_v27 }
 0x17d   :  { %1115 = vmatpush3.msra.mxu0 %v378_v5 }
 0x17e   :  { %1116 = vmatprep.subr.mxu0 %v1151_v38 }
 0x17f   :  { %1117 = vmatpush3.msra.mxu0 %v377_v6 }
 0x180   :  { %1119 = vmatmul.mubr.msk.f32.vlgmr.msra.gmra.mxu0 %vm398_vm3, %v312_v7  ;;  %1013 = vmatprep.subr.msk.mxu0 %vm51_vm0, %v791_v8 }
 0x181   :  { %1014 = vmatpush1.msk.msra.mxu0 %vm51_vm0, %v790_v9  ;;  %880 = vmatprep.mubr.f32.mxu0 %v1151_v38 }
 0x182   :  { %840 = vmatprep.subr.mxu0 %v787_v10 }
 0x183   :  { %841 = vmatpush1.msra.mxu0 %v786_v11 }
 0x184   :  { %842 = vmatprep.subr.mxu0 %v783_v12 }
 0x185   :  { %843 = vmatpush1.msra.mxu0 %v782_v13 }
 0x186   :  { %844 = vmatprep.subr.mxu0 %v779_v14 }
 0x187   :  { %845 = vmatpush1.msra.mxu0 %v778_v15 }
 0x188   :  { %846 = vmatprep.subr.mxu0 %v775_v16 }
 0x189   :  { %847 = vmatpush1.msra.mxu0 %v774_v17 }
 0x18a   :  { %1015 = vmatmul.mubr.msk.f32.vlgmr.msra.gmra.mxu0 %vm800_vm4, %v1532_v18 }
 0x20e   :  { %v224_v29 = vpop.f32.mrf.mxu0  ;;  %v295_v30 = vpop.f32.mrf.mxu1 }
 0x20f   :  { %v225_v34 = vadd.f32 %v224_v29, %v140_v31  ;;  %v296_v35 = vadd.f32 %v295_v30, %v140_v31 }
 0x210   :  { %v226_v32 = vpop.f32.mrf.mxu0  ;;  %v297_v33 = vpop.f32.mrf.mxu1 }
 0x211   :  { %v227_v36 = vadd.f32 %v226_v32, %v140_v31  ;;  %v298_v37 = vadd.f32 %v297_v33, %v140_v31 }
 0x213   :  { %v304_v39 = vcombine.low %v225_v34, %v227_v36  ;;  %v305_v40 = vcombine.low %v296_v35, %v298_v37 }
 0x215   :  { %308 = vst [vmem:[%s1652_s12] sm:$0xff] %v304_v39  ;;  %309 = vst [vmem:[%s1652_s12 + $0x8] sm:$0xff] %v305_v40 }
 0x22f   :  { %v1055_v41 = vpop.f32.mrf.mxu0 }
 0x231   :  { %v1056_v42 = vpop.f32.mrf.mxu0  ;;  %v1090_v43 = vpop.f32.mrf.mxu1 }
 0x232   :  { %v1057_v44 = vadd.f32 %v1056_v42, %v1055_v41 }
 0x233   :  { %v1091_v45 = vpop.f32.mrf.mxu1 }
 0x234   :  { %v1092_v47 = vadd.f32 %v1091_v45, %v1090_v43  ;;  %v468_v48 = vadd.f32 %v1057_v44, %v389_v46 }
 0x236   :  { %v538_v49 = vadd.f32 %v1092_v47, %v468_v48 }
 0x240   :  { %v607_v50 = vpop.f32.mrf.mxu0 }
 0x241   :  { %v608_v51 = vadd.f32 %v607_v50, %v538_v49 }
 0x242   :  { %v1120_v53 = vpop.f32.mrf.mxu0 }
 0x243   :  { %1011 = vmatmul.mubr.msk.f32.vlgmr.msra.gmra.mxu1 %vm627_vm5, %v608_v51 }
 0x244   :  { %727 = vmatpush1.msra.mxu1 %v625_v52  ;;  %766 = vmatprep.mubr.f32.mxu1 %v1151_v38 }
 0x245   :  { %728 = vmatprep.subr.mxu1 %v622_v54 }
 0x246   :  { %729 = vmatpush1.msra.mxu1 %v621_v55 }
 0x247   :  { %730 = vmatprep.subr.mxu1 %v618_v56 }
 0x248   :  { %731 = vmatpush1.msra.mxu1 %v617_v57 }
 0x249   :  { %732 = vmatprep.subr.mxu1 %v614_v58 }
 0x24a   :  { %733 = vmatpush1.msra.mxu1 %v613_v59  ;;  %v882_v20 = vpop.f32.mrf.mxu0 }
 0x24b   :  { %1012 = vmatmul.mubr.msk.f32.vlgmr.msra.gmra.mxu1 %vm627_vm5, %v608_v51  ;;  %1016 = vmatprep.subr.msk.mxu1 %vm51_vm0, %v793_v60  ;;  %v883_v24 = vadd.f32 %v882_v20, %v1563_v28 }
 0x24c   :  { %1017 = vmatpush1.msk.msra.mxu1 %vm51_vm0, %v792_v61  ;;  %951 = vmatprep.mubr.f32.mxu1 %v1151_v38  ;;  %v777_v38 = vld [vmem:[%s1649_s9 + $0x18] sm:$0xff]  ;;  %v884_v22 = vpop.f32.mrf.mxu0 }
 0x24d   :  { %911 = vmatprep.subr.mxu1 %v789_v62  ;;  %v885_v25 = vadd.f32 %v884_v22, %v1563_v28 }
 0x24e   :  { %912 = vmatpush1.msra.mxu1 %v788_v63 }
 0x24f   :  { %913 = vmatprep.subr.mxu1 %v785_v0 }
 0x250   :  { %914 = vmatpush1.msra.mxu1 %v784_v1 }
 0x251   :  { %915 = vmatprep.subr.mxu1 %v781_v2 }
 0x252   :  { %916 = vmatpush1.msra.mxu1 %v780_v3 }
 0x253   :  { %917 = vmatprep.subr.mxu1 %v777_v38 }
 0x254   :  { %918 = vmatpush1.msra.mxu1 %v776_v4 }
 0x255   :  { %1018 = vmatmul.mubr.msk.f32.vlgmr.msra.gmra.mxu1 %vm800_vm4, %v1532_v18 }
 0x303   :  { %v697_v5 = vpop.f32.mrf.mxu1 }
 0x304   :  { %v1019_v6 = vmul.f32 -1.442695, %v697_v5 }
 0x305   :  { %v699_v7 = vpop.f32.mrf.mxu1 }
 0x306   :  { %1133 = vpow2.f32 %v1019_v6  ;;  %v1020_v8 = vmul.f32 -1.442695, %v699_v7 }
 0x308   :  { %1135 = vpow2.f32 %v1020_v8 }
 0x30b   :  { %v768_v9 = vpop.f32.mrf.mxu1 }
 0x30c   :  { %v1021_v10 = vmul.f32 -1.442695, %v768_v9 }
 0x30d   :  { %v770_v11 = vpop.f32.mrf.mxu1 }
 0x30e   :  { %1137 = vpow2.f32 %v1021_v10  ;;  %v1022_v12 = vmul.f32 -1.442695, %v770_v11 }
 0x310   :  { %1139 = vpow2.f32 %v1022_v12 }
 0x313   :  { %v1134_v13 = vpop.eup %1133 }
 0x314   :  { %v970_v14 = vadd.f32 1.0, %v1134_v13 }
 0x315   :  { %v1136_v15 = vpop.eup %1135  ;;  %v953_v27 = vpop.f32.mrf.mxu1 }
 0x316   :  { %1141 = vrcp.f32 %v970_v14  ;;  %v971_v16 = vadd.f32 1.0, %v1136_v15  ;;  %v954_v34 = vadd.f32 %v953_v27, %v1563_v28 }
 0x317   :  { %v955_v32 = vpop.f32.mrf.mxu1 }
 0x318   :  { %1143 = vrcp.f32 %v971_v16  ;;  %v956_v35 = vadd.f32 %v955_v32, %v1563_v28 }
 0x31b   :  { %v1138_v17 = vpop.eup %1137 }
 0x31c   :  { %v972_v18 = vadd.f32 1.0, %v1138_v17 }
 0x31d   :  { %v1140_v19 = vpop.eup %1139 }
 0x31e   :  { %1145 = vrcp.f32 %v972_v18  ;;  %v973_v21 = vadd.f32 1.0, %v1140_v19 }
 0x320   :  { %1147 = vrcp.f32 %v973_v21 }
 0x323   :  { %v1142_v23 = vpop.eup %1141 }
 0x324   :  { %v982_v29 = vmul.f32 %v1142_v23, %v883_v24 }
 0x325   :  { %v1144_v26 = vpop.eup %1143 }
 0x326   :  { %v983_v30 = vmul.f32 %v1144_v26, %v885_v25 }
 0x328   :  { %v990_v31 = vcombine.low %v982_v29, %v983_v30 }
 0x32a   :  { %994 = vst [vmem:[%s1653_s13] sm:$0xff] %v990_v31 }
 0x32b   :  { %v1146_v33 = vpop.eup %1145 }
 0x32c   :  { %v984_v37 = vmul.f32 %v1146_v33, %v954_v34 }
 0x32d   :  { %v1148_v36 = vpop.eup %1147 }
 0x32e   :  { %v985_v39 = vmul.f32 %v1148_v36, %v956_v35 }
 0x330   :  { %v991_v40 = vcombine.low %v984_v37, %v985_v39 }
 0x332   :  { %995 = vst [vmem:[%s1653_s13 + $0x8] sm:$0xff] %v991_v40 }

// kernel: gcam_forward.4
= control target key start
LH: loop header
LB: loop body
LE: loop exit
PB: predicated region body
PF: predicated region fallthrough
CT: control target
= control target key end

     0   :  { %s951_s27 = smov 0   ;;  %s953_s28 = smov 0   ;;  %s1134_s0 = inlined_call_operand.vmem [shape: f32[100,512], index: 0, kind: input, shape index: {}]   ;;  %s1135_s1 = inlined_call_operand.vmem [shape: f32[4,100], index: 1, kind: input, shape index: {}]   ;;  %s1136_s2 = inlined_call_operand.vmem [shape: f32[4,1], index: 2, kind: input, shape index: {}]   ;;  %s1137_s3 = inlined_call_operand.vmem [shape: f32[36,512], index: 3, kind: input, shape index: {}]   ;;  %s1138_s4 = inlined_call_operand.vmem [shape: f32[4,36], index: 4, kind: input, shape index: {}]   ;;  %s1139_s5 = inlined_call_operand.vmem [shape: f32[4,1], index: 5, kind: input, shape index: {}]   ;;  %s1140_s6 = inlined_call_operand.vmem [shape: f32[4,512], index: 6, kind: input, shape index: {}]   ;;  %s1141_s7 = inlined_call_operand.vmem [shape: f32[4,512], index: 7, kind: output, shape index: {0}]   ;;  %s1142_s8 = inlined_call_operand.vmem [shape: f32[4,512], index: 8, kind: output, shape index: {1}]  }
   0x1   :  { %s955_s29 = smov 0  }
   0x2 LB: > { %s824_s30 = sadd.s32 4294967295, %s902_s29   ;;  %s968_s9 = sadd.s32 1, %s902_s29   ;;  %s902_s29 = sphi %s955_s29, %s1146_s29   ;;  %s898_s28 = sphi %s953_s28, %s1145_s28   ;;  %s894_s27 = sphi %s951_s27, %s1144_s27  }
   0x3   : > { %s23_s10 = ssub.s32 %s902_s29, %s968_s9  ;;  %s26_s11 = sadd.s32 1, %s898_s28 }
   0x4   : > { %p24_p0 = scmp.eq.s32.totalorder %s23_s10, 0  ;;  %p33_p1 = scmp.ne.s32.totalorder %s898_s28, %s894_s27 }
   0x5   : > { %p34_p2 = scmp.eq.s32.totalorder %s902_s29, 0  ;;  %p827_p4 = scmp.ge.s32.totalorder %s902_s29, 2 }
   0x6   : > { %s977_s12 = scalar_select %p24_p0, %s898_s28, %s26_s11  }
   0x7   : > { %p979_p3 = por %p34_p2, %p33_p1  ;;  %259 = sbr.rel (%p827_p4) target bundleno = 38 (0x26), region = 32 }
   0xc   : > { %262 = sbr.rel (!%p979_p3) target bundleno = 29 (0x1d), region = 36  ;;  %s264_s14 = sand.u32 (%p979_p3), 1, %s898_s28  }
   0xd   : > { %s847_s15 = sshll.u32 (%p979_p3), %s902_s29, 4  ;;  %s849_s16 = smul.u32 (%p979_p3), 208, %s264_s14 }
   0xe   : > { %s991_s19 = scalar_lea.vmem (%p979_p3), %s1134_s0, %s847_s15 }
   0xf   : > { %v282_v0 = vld [vmem:[%s991_s19] sm:$0xff] (%p979_p3)  ;;  %v284_v1 = vld [vmem:[%s991_s19 + $0x8] sm:$0xff] (%p979_p3)  ;;  %s999_s20 = scalar_lea.vmem (%p979_p3), [#allocation2], %s849_s16 }
  0x10   : > { %v286_v2 = vld [vmem:[%s991_s19 + $0x20] sm:$0xff] (%p979_p3)  ;;  %v288_v3 = vld [vmem:[%s991_s19 + $0x28] sm:$0xff] (%p979_p3)  ;;  %283 = vst [vmem:[%s999_s20] sm:$0xff] (%p979_p3), %v282_v0  ;;  %285 = vst [vmem:[%s999_s20 + $0x8] sm:$0xff] (%p979_p3), %v284_v1 }
  0x11   : > { %v290_v4 = vld [vmem:[%s991_s19 + $0x40] sm:$0xff]  ;;  %v292_v5 = vld [vmem:[%s991_s19 + $0x48] sm:$0xff]  ;;  %287 = vst [vmem:[%s999_s20 + $0x10] sm:$0xff] %v286_v2  ;;  %289 = vst [vmem:[%s999_s20 + $0x18] sm:$0xff] %v288_v3 }
  0x12   : > { %291 = vst [vmem:[%s999_s20 + $0x20] sm:$0xff] %v290_v4  ;;  %293 = vst [vmem:[%s999_s20 + $0x28] sm:$0xff] %v292_v5  ;;  %v294_v6 = vld [vmem:[%s991_s19 + $0x60] sm:$0xff]  ;;  %v296_v7 = vld [vmem:[%s991_s19 + $0x68] sm:$0xff] }
  0x13   : > { %v298_v8 = vld [vmem:[%s991_s19 + $0x80] sm:$0xff]  ;;  %295 = vst [vmem:[%s999_s20 + $0x30] sm:$0xff] %v294_v6  ;;  %297 = vst [vmem:[%s999_s20 + $0x38] sm:$0xff] %v296_v7  ;;  %v300_v9 = vld [vmem:[%s991_s19 + $0x88] sm:$0xff] }
  0x14   : > { %299 = vst [vmem:[%s999_s20 + $0x40] sm:$0xff] %v298_v8  ;;  %v302_v10 = vld [vmem:[%s991_s19 + $0xa0] sm:$0xff]  ;;  %v304_v11 = vld [vmem:[%s991_s19 + $0xa8] sm:$0xff]  ;;  %301 = vst [vmem:[%s999_s20 + $0x48] sm:$0xff] %v300_v9 }
  0x15   : > { %303 = vst [vmem:[%s999_s20 + $0x50] sm:$0xff] %v302_v10  ;;  %305 = vst [vmem:[%s999_s20 + $0x58] sm:$0xff] %v304_v11  ;;  %v306_v12 = vld [vmem:[%s991_s19 + $0xc0] sm:$0xff]  ;;  %v308_v13 = vld [vmem:[%s991_s19 + $0xc8] sm:$0xff] }
  0x16   : > { %v310_v14 = vld [vmem:[%s991_s19 + $0xe0] sm:$0xff]  ;;  %307 = vst [vmem:[%s999_s20 + $0x60] sm:$0xff] %v306_v12  ;;  %309 = vst [vmem:[%s999_s20 + $0x68] sm:$0xff] %v308_v13  ;;  %v312_v15 = vld [vmem:[%s991_s19 + $0xe8] sm:$0xff] }
  0x17   : > { %311 = vst [vmem:[%s999_s20 + $0x70] sm:$0xff] %v310_v14  ;;  %v314_v16 = vld [vmem:[%s991_s19 + $0x100] sm:$0xff]  ;;  %v316_v17 = vld [vmem:[%s991_s19 + $0x108] sm:$0xff]  ;;  %313 = vst [vmem:[%s999_s20 + $0x78] sm:$0xff] %v312_v15 }
  0x18   : > { %315 = vst [vmem:[%s999_s20 + $0x80] sm:$0xff] %v314_v16  ;;  %317 = vst [vmem:[%s999_s20 + $0x88] sm:$0xff] %v316_v17  ;;  %v318_v18 = vld [vmem:[%s991_s19 + $0x120] sm:$0xff]  ;;  %v320_v19 = vld [vmem:[%s991_s19 + $0x128] sm:$0xff] }
  0x19   : > { %v322_v20 = vld [vmem:[%s991_s19 + $0x140] sm:$0xff]  ;;  %319 = vst [vmem:[%s999_s20 + $0x90] sm:$0xff] %v318_v18  ;;  %321 = vst [vmem:[%s999_s20 + $0x98] sm:$0xff] %v320_v19  ;;  %v324_v21 = vld [vmem:[%s991_s19 + $0x148] sm:$0xff] }
  0x1a   : > { %323 = vst [vmem:[%s999_s20 + $0xa0] sm:$0xff] %v322_v20  ;;  %v326_v22 = vld [vmem:[%s991_s19 + $0x160] sm:$0xff]  ;;  %v328_v23 = vld [vmem:[%s991_s19 + $0x168] sm:$0xff]  ;;  %325 = vst [vmem:[%s999_s20 + $0xa8] sm:$0xff] %v324_v21 }
  0x1b   : > { %327 = vst [vmem:[%s999_s20 + $0xb0] sm:$0xff] %v326_v22  ;;  %329 = vst [vmem:[%s999_s20 + $0xb8] sm:$0xff] %v328_v23  ;;  %v330_v24 = vld [vmem:[%s991_s19 + $0x180] sm:$0xff]  ;;  %v332_v25 = vld [vmem:[%s991_s19 + $0x188] sm:$0xff] }
  0x1c   : > { %331 = vst [vmem:[%s999_s20 + $0xc0] sm:$0xff] %v330_v24  ;;  %333 = vst [vmem:[%s999_s20 + $0xc8] sm:$0xff] %v332_v25 }
  0x1d PF: > { %339 = sbr.rel (!%p979_p3) target bundleno = 38 (0x26), region = 59  ;;  %s341_s21 = sand.u32 (%p979_p3), 1, %s898_s28  }
  0x1e   : > { %s848_s22 = sshll.u32 (%p979_p3), %s902_s29, 4  ;;  %s850_s23 = smul.u32 (%p979_p3), 80, %s341_s21 }
  0x1f   : > { %s346_s26 = scalar_lea.vmem (%p979_p3), %s1137_s3, %s848_s22 }
  0x20   : > { %v359_v26 = vld [vmem:[%s346_s26] sm:$0xff] (%p979_p3)  ;;  %v361_v27 = vld [vmem:[%s346_s26 + $0x8] sm:$0xff] (%p979_p3)  ;;  %s343_s10 = scalar_lea.vmem (%p979_p3), [#allocation3], %s850_s23 }
  0x21   : > { %v363_v28 = vld [vmem:[%s346_s26 + $0x20] sm:$0xff] (%p979_p3)  ;;  %v365_v29 = vld [vmem:[%s346_s26 + $0x28] sm:$0xff] (%p979_p3)  ;;  %360 = vst [vmem:[%s343_s10] sm:$0xff] (%p979_p3), %v359_v26  ;;  %362 = vst [vmem:[%s343_s10 + $0x8] sm:$0xff] (%p979_p3), %v361_v27 }
  0x22   : > { %v367_v30 = vld [vmem:[%s346_s26 + $0x40] sm:$0xff]  ;;  %v369_v31 = vld [vmem:[%s346_s26 + $0x48] sm:$0xff]  ;;  %364 = vst [vmem:[%s343_s10 + $0x10] sm:$0xff] %v363_v28  ;;  %366 = vst [vmem:[%s343_s10 + $0x18] sm:$0xff] %v365_v29 }
  0x23   : > { %368 = vst [vmem:[%s343_s10 + $0x20] sm:$0xff] %v367_v30  ;;  %370 = vst [vmem:[%s343_s10 + $0x28] sm:$0xff] %v369_v31  ;;  %v371_v32 = vld [vmem:[%s346_s26 + $0x60] sm:$0xff]  ;;  %v373_v33 = vld [vmem:[%s346_s26 + $0x68] sm:$0xff] }
  0x24   : > { %v375_v34 = vld [vmem:[%s346_s26 + $0x80] sm:$0xff]  ;;  %372 = vst [vmem:[%s343_s10 + $0x30] sm:$0xff] %v371_v32  ;;  %374 = vst [vmem:[%s343_s10 + $0x38] sm:$0xff] %v373_v33  ;;  %v377_v35 = vld [vmem:[%s346_s26 + $0x88] sm:$0xff] }
  0x25   : > { %376 = vst [vmem:[%s343_s10 + $0x40] sm:$0xff] %v375_v34  ;;  %378 = vst [vmem:[%s343_s10 + $0x48] sm:$0xff] %v377_v35 }
  0x26 PF: > { %p832_p5 = scmp.ge.s32.totalorder %s902_s29, 1  ;;  %p392_p6 = scmp.lt.s32.totalorder %s902_s29, 3 }
  0x28   : > { %p393_p7 = pnand %p832_p5, %p392_p6 }
  0x29   : > { %s399_s11 = sand.u32 (!%p393_p7), 1, %s894_s27   ;;  %s833_s24 = sshll.u32 (!%p393_p7), %s824_s30, 1 }
  0x2a   : > { %396 = sbr.rel (%p393_p7) target bundleno = 275 (0x113), region = 86  ;;  %p456_p8 = scmp.lt.s32.totalorder (!%p393_p7), %s833_s24, 3 }
  0x2b   : > { %s851_s13 = smul.u32 (!%p393_p7), 208, %s399_s11 }
  0x2c   : > { %s852_s14 = smul.u32 (!%p393_p7), 80, %s399_s11 }
  0x2d   : > { %s1063_s19 = scalar_lea.vmem (!%p393_p7), [#allocation2], %s851_s13 }
  0x2e   : > { %s1074_s27 = scalar_lea.vmem (!%p393_p7), [#allocation3], %s852_s14 }
  0x2f   : > { %v904_v36 = vmov 0.0   ;;  %vm510_vm0 = vcmask 1043456   ;;  %v905_v37 = vmov 0   ;;  %v604_v38 = vld [vmem:[%s1139_s5] sm:$0xf]  ;;  %v497_v42 = vld [vmem:[%s1063_s19 + $0xb8] sm:$0xff] }
  0x30   : > { %684 = vmatprep.mubr.f32.mxu1 %v904_v36  ;;  %581 = vmatprep.mubr.f32.mxu0 %v904_v36  ;;  %v500_v39 = vld [vmem:[%s1136_s2] sm:$0xf]  ;;  %v499_v40 = vld [vmem:[%s1063_s19 + $0xc8] sm:$0xf]  ;;  %v493_v46 = vld [vmem:[%s1063_s19 + $0x98] sm:$0xff]  ;;  %vm610_vm1 = vcmask 293888  }
  0x31   : > { %879 = vset.pattern.permute.xlu0 %v905_v37  ;;  %v498_v41 = vld [vmem:[%s1063_s19 + $0xc0] sm:$0xf]  ;;  %839 = vmatprep.subr.msk.mxu0 %vm510_vm0, %v499_v40  ;;  %v496_v43 = vld [vmem:[%s1063_s19 + $0xb0] sm:$0xff]  ;;  %v495_v44 = vld [vmem:[%s1063_s19 + $0xa8] sm:$0xff]  ;;  %vm506_vm2 = vcmask 818176   ;;  %s1148_s24 = smov (!%p456_p8, %s833_s24), 3 }
  0x32   : > { %607 = vperm.xlu0 %879, %v604_v38   ;;  %840 = vmatpush1.msk.msra.mxu0 %vm510_vm0, %v498_v41  ;;  %v494_v45 = vld [vmem:[%s1063_s19 + $0xa0] sm:$0xff]  ;;  %v603_v47 = vld [vmem:[%s1074_s27 + $0x48] sm:$0xf]  ;;  %v492_v48 = vld [vmem:[%s1063_s19 + $0x90] sm:$0xff]  ;;  %s834_s25 = sshll.u32 %s1148_s24, 2 }
  0x33   : > { %525 = vmatprep.subr.mxu0 %v497_v42  ;;  %842 = vmatprep.subr.msk.mxu1 %vm510_vm0, %v603_v47  ;;  %v602_v49 = vld [vmem:[%s1074_s27 + $0x40] sm:$0xf]  ;;  %v601_v50 = vld [vmem:[%s1074_s27 + $0x38] sm:$0xff]  ;;  %v491_v51 = vld [vmem:[%s1063_s19 + $0x88] sm:$0xff]  ;;  %s459_s11 = scalar_lea.vmem %s1140_s6, %s834_s25  ;;  %s471_s15 = scalar_lea.vmem %s1142_s8, %s834_s25 }
  0x34   : > { %526 = vmatpush1.msra.mxu0 %v496_v43  ;;  %843 = vmatpush1.msk.msra.mxu1 %vm510_vm0, %v602_v49  ;;  %v600_v52 = vld [vmem:[%s1074_s27 + $0x30] sm:$0xff]  ;;  %v490_v53 = vld [vmem:[%s1063_s19 + $0x80] sm:$0xff]  ;;  %v599_v54 = vld [vmem:[%s1074_s27 + $0x28] sm:$0xff]  ;;  %s465_s16 = scalar_lea.vmem %s1141_s7, %s834_s25 }
  0x35   : > { %527 = vmatprep.subr.mxu0 %v495_v44  ;;  %644 = vmatprep.subr.mxu1 %v601_v50  ;;  %v598_v55 = vld [vmem:[%s1074_s27 + $0x20] sm:$0xff]  ;;  %v489_v56 = vld [vmem:[%s1063_s19 + $0x78] sm:$0xff]  ;;  %v488_v58 = vld [vmem:[%s1063_s19 + $0x70] sm:$0xff] }
  0x36   : > { %503 = vperm.xlu0 %879, %v500_v39   ;;  %528 = vmatpush1.msra.mxu0 %v494_v45  ;;  %v597_v57 = vld [vmem:[%s1074_s27 + $0x18] sm:$0xff]  ;;  %v596_v59 = vld [vmem:[%s1074_s27 + $0x10] sm:$0xff]  ;;  %v487_v60 = vld [vmem:[%s1063_s19 + $0x68] sm:$0xff] }
  0x37   : > { %529 = vmatprep.subr.mxu0 %v493_v46  ;;  %645 = vmatpush1.msra.mxu1 %v600_v52  ;;  %v595_v61 = vld [vmem:[%s1074_s27 + $0x8] sm:$0xff]  ;;  %v486_v62 = vld [vmem:[%s1063_s19 + $0x60] sm:$0xff]  ;;  %v485_v0 = vld [vmem:[%s1063_s19 + $0x58] sm:$0xff] }
  0x38   : > { %530 = vmatpush1.msra.mxu0 %v492_v48  ;;  %646 = vmatprep.subr.mxu1 %v599_v54  ;;  %v594_v63 = vld [vmem:[%s1074_s27] sm:$0xff]  ;;  %v484_v2 = vld [vmem:[%s1063_s19 + $0x50] sm:$0xff]  ;;  %v483_v3 = vld [vmem:[%s1063_s19 + $0x48] sm:$0xff] }
  0x39   : > { %531 = vmatprep.subr.mxu0 %v491_v51  ;;  %647 = vmatpush1.msra.mxu1 %v598_v55  ;;  %v593_v1 = vld [vmem:[%s1138_s4] sm:$0xf]  ;;  %v481_v5 = vld [vmem:[%s1063_s19 + $0x38] sm:$0xff]  ;;  %v479_v7 = vld [vmem:[%s1063_s19 + $0x28] sm:$0xff] }
  0x3a   : > { %532 = vmatpush1.msra.mxu0 %v490_v53  ;;  %648 = vmatprep.subr.mxu1 %v597_v57  ;;  %v482_v4 = vld [vmem:[%s1063_s19 + $0x40] sm:$0xff]  ;;  %v480_v6 = vld [vmem:[%s1063_s19 + $0x30] sm:$0xff]  ;;  %v477_v9 = vld [vmem:[%s1063_s19 + $0x18] sm:$0xff] }
  0x3b   : > { %533 = vmatprep.subr.mxu0 %v489_v56  ;;  %649 = vmatpush1.msra.mxu1 %v596_v59  ;;  %v478_v8 = vld [vmem:[%s1063_s19 + $0x20] sm:$0xff]  ;;  %v476_v10 = vld [vmem:[%s1063_s19 + $0x10] sm:$0xff]  ;;  %v475_v11 = vld [vmem:[%s1063_s19 + $0x8] sm:$0xff] }
  0x3c   : > { %534 = vmatpush1.msra.mxu0 %v488_v58  ;;  %650 = vmatprep.subr.mxu1 %v595_v61  ;;  %v474_v12 = vld [vmem:[%s1063_s19] sm:$0xff] }
  0x3d   : > { %535 = vmatprep.subr.mxu0 %v487_v60  ;;  %651 = vmatpush1.msra.mxu1 %v594_v63  ;;  %v473_v13 = vld [vmem:[%s1135_s1] sm:$0xf] }
  0x3e   : > { %536 = vmatpush1.msra.mxu0 %v486_v62  ;;  %844 = vmatmul.mubr.msk.f32.vlgmr.msra.gmra.mxu1 %vm610_vm1, %v593_v1  ;;  %v691_v19 = vld [vmem:[%s459_s11] sm:$0xff] }
  0x3f   : > { %537 = vmatprep.subr.mxu0 %v485_v0 }
  0x40   : > { %538 = vmatpush1.msra.mxu0 %v484_v2 }
  0x41   : > { %539 = vmatprep.subr.mxu0 %v483_v3 }
  0x42   : > { %540 = vmatpush1.msra.mxu0 %v482_v4 }
  0x43   : > { %541 = vmatprep.subr.mxu0 %v481_v5 }
  0x44   : > { %542 = vmatpush1.msra.mxu0 %v480_v6 }
  0x45   : > { %543 = vmatprep.subr.mxu0 %v479_v7 }
  0x46   : > { %544 = vmatpush1.msra.mxu0 %v478_v8 }
  0x47   : > { %545 = vmatprep.subr.mxu0 %v477_v9 }
  0x48   : > { %546 = vmatpush1.msra.mxu0 %v476_v10 }
  0x49   : > { %547 = vmatprep.subr.mxu0 %v475_v11 }
  0x4a   : > { %548 = vmatpush1.msra.mxu0 %v474_v12 }
  0x4b   : > { %841 = vmatmul.mubr.msk.f32.vlgmr.msra.gmra.mxu0 %vm506_vm2, %v473_v13 }
  0xad   : > { %v608_v14 = vpop.permute.xlu0 %607 }
  0xb1   : > { %v504_v23 = vpop.permute.xlu0 %503 }
  0xfe   : > { %v686_v15 = vpop.f32.mrf.mxu1 }
  0xff   : > { %v687_v16 = vadd.f32 %v686_v15, %v608_v14 }
 0x100   : > { %v688_v17 = vpop.f32.mrf.mxu1 }
 0x101   : > { %v689_v18 = vadd.f32 %v688_v17, %v608_v14 }
 0x103   : > { %v694_v20 = vcombine.low %v687_v16, %v689_v18 }
 0x105   : > { %v696_v21 = vadd.f32 %v694_v20, %v691_v19 }
 0x107   : > { %697 = vst [vmem:[%s471_s15] sm:$0xff] %v696_v21 }
 0x10b   : > { %v583_v22 = vpop.f32.mrf.mxu0 }
 0x10c   : > { %v584_v25 = vadd.f32 %v583_v22, %v504_v23 }
 0x10d   : > { %v585_v24 = vpop.f32.mrf.mxu0 }
 0x10e   : > { %v586_v26 = vadd.f32 %v585_v24, %v504_v23 }
 0x110   : > { %v590_v27 = vcombine.low %v584_v25, %v586_v26 }
 0x112   : > { %592 = vst [vmem:[%s465_s16] sm:$0xff] %v590_v27 }
 0x113 PF: > { %p16_p9 = scmp.ge.s32.totalorder %s968_s9, 4   ;;  %s1144_s27 = smov %s898_s28 }
 0x114   : > { %s1145_s28 = smov %s977_s12  ;;  %s1146_s29 = smov %s968_s9 }
 0x115   :  { %18 = sbr.rel (!%p16_p9) target bundleno = 2 (0x2), region = 152 }

// kernel: gcam_forward.5
= control target key start
LH: loop header
LB: loop body
LE: loop exit
PB: predicated region body
PF: predicated region fallthrough
CT: control target
= control target key end

     0   :  { %s851_s21 = smov 0   ;;  %s853_s22 = smov 0   ;;  %s1031_s0 = inlined_call_operand.vmem [shape: f32[108,512], index: 0, kind: input, shape index: {}]   ;;  %s1032_s1 = inlined_call_operand.vmem [shape: f32[32,108], index: 1, kind: input, shape index: {}]   ;;  %s1033_s2 = inlined_call_operand.vmem [shape: f32[32,1], index: 2, kind: input, shape index: {}]   ;;  %s1034_s3 = inlined_call_operand.vmem [shape: f32[4,32], index: 3, kind: input, shape index: {}]   ;;  %s1035_s4 = inlined_call_operand.vmem [shape: f32[4,1], index: 4, kind: input, shape index: {}]   ;;  %s1036_s5 = inlined_call_operand.vmem [shape: f32[4,512], index: 5, kind: input, shape index: {}]   ;;  %s1037_s6 = inlined_call_operand.vmem [shape: f32[4,512], index: 6, kind: output, shape index: {}]  }
   0x1   :  { %s855_s23 = smov 0  }
   0x2 LB: > { %s722_s24 = sadd.s32 4294967295, %s812_s23   ;;  %s868_s25 = sadd.s32 1, %s812_s23   ;;  %s812_s23 = sphi %s855_s23, %s1040_s23   ;;  %s808_s22 = sphi %s853_s22, %s1039_s22   ;;  %s804_s21 = sphi %s851_s21, %s1038_s21  }
   0x3   : > { %s20_s26 = ssub.s32 %s812_s23, %s868_s25  ;;  %s23_s27 = sadd.s32 1, %s808_s22 }
   0x4   : > { %p21_p0 = scmp.eq.s32.totalorder %s20_s26, 0  ;;  %p30_p1 = scmp.ne.s32.totalorder %s808_s22, %s804_s21 }
   0x5   : > { %p31_p2 = scmp.eq.s32.totalorder %s812_s23, 0  ;;  %p725_p4 = scmp.ge.s32.totalorder %s812_s23, 2 }
   0x6   : > { %s877_s28 = scalar_select %p21_p0, %s808_s22, %s23_s27  }
   0x7   : > { %p32_p3 = por %p31_p2, %p30_p1  ;;  %204 = sbr.rel (%p725_p4) target bundleno = 30 (0x1e), region = 32 }
   0xc   : > { %207 = sbr.rel (!%p32_p3) target bundleno = 30 (0x1e), region = 36  ;;  %s209_s29 = sand.u32 (%p32_p3), 1, %s808_s22  }
   0xd   : > { %s742_s30 = sshll.u32 (%p32_p3), %s812_s23, 4  ;;  %s743_s7 = smul.u32 (%p32_p3), 224, %s209_s29 }
   0xe   : > { %s885_s10 = scalar_lea.vmem (%p32_p3), %s1031_s0, %s742_s30 }
   0xf   : > { %v227_v0 = vld [vmem:[%s885_s10] sm:$0xff] (%p32_p3)  ;;  %v229_v1 = vld [vmem:[%s885_s10 + $0x8] sm:$0xff] (%p32_p3)  ;;  %s893_s11 = scalar_lea.vmem (%p32_p3), [#allocation2], %s743_s7 }
  0x10   : > { %v231_v2 = vld [vmem:[%s885_s10 + $0x20] sm:$0xff] (%p32_p3)  ;;  %v233_v3 = vld [vmem:[%s885_s10 + $0x28] sm:$0xff] (%p32_p3)  ;;  %228 = vst [vmem:[%s893_s11] sm:$0xff] (%p32_p3), %v227_v0  ;;  %230 = vst [vmem:[%s893_s11 + $0x8] sm:$0xff] (%p32_p3), %v229_v1 }
  0x11   : > { %v235_v4 = vld [vmem:[%s885_s10 + $0x40] sm:$0xff]  ;;  %v237_v5 = vld [vmem:[%s885_s10 + $0x48] sm:$0xff]  ;;  %232 = vst [vmem:[%s893_s11 + $0x10] sm:$0xff] %v231_v2  ;;  %234 = vst [vmem:[%s893_s11 + $0x18] sm:$0xff] %v233_v3 }
  0x12   : > { %236 = vst [vmem:[%s893_s11 + $0x20] sm:$0xff] %v235_v4  ;;  %238 = vst [vmem:[%s893_s11 + $0x28] sm:$0xff] %v237_v5  ;;  %v239_v6 = vld [vmem:[%s885_s10 + $0x60] sm:$0xff]  ;;  %v241_v7 = vld [vmem:[%s885_s10 + $0x68] sm:$0xff] }
  0x13   : > { %v243_v8 = vld [vmem:[%s885_s10 + $0x80] sm:$0xff]  ;;  %240 = vst [vmem:[%s893_s11 + $0x30] sm:$0xff] %v239_v6  ;;  %242 = vst [vmem:[%s893_s11 + $0x38] sm:$0xff] %v241_v7  ;;  %v245_v9 = vld [vmem:[%s885_s10 + $0x88] sm:$0xff] }
  0x14   : > { %244 = vst [vmem:[%s893_s11 + $0x40] sm:$0xff] %v243_v8  ;;  %v247_v10 = vld [vmem:[%s885_s10 + $0xa0] sm:$0xff]  ;;  %v249_v11 = vld [vmem:[%s885_s10 + $0xa8] sm:$0xff]  ;;  %246 = vst [vmem:[%s893_s11 + $0x48] sm:$0xff] %v245_v9 }
  0x15   : > { %248 = vst [vmem:[%s893_s11 + $0x50] sm:$0xff] %v247_v10  ;;  %250 = vst [vmem:[%s893_s11 + $0x58] sm:$0xff] %v249_v11  ;;  %v251_v12 = vld [vmem:[%s885_s10 + $0xc0] sm:$0xff]  ;;  %v253_v13 = vld [vmem:[%s885_s10 + $0xc8] sm:$0xff] }
  0x16   : > { %v255_v14 = vld [vmem:[%s885_s10 + $0xe0] sm:$0xff]  ;;  %252 = vst [vmem:[%s893_s11 + $0x60] sm:$0xff] %v251_v12  ;;  %254 = vst [vmem:[%s893_s11 + $0x68] sm:$0xff] %v253_v13  ;;  %v257_v15 = vld [vmem:[%s885_s10 + $0xe8] sm:$0xff] }
  0x17   : > { %256 = vst [vmem:[%s893_s11 + $0x70] sm:$0xff] %v255_v14  ;;  %v259_v16 = vld [vmem:[%s885_s10 + $0x100] sm:$0xff]  ;;  %v261_v17 = vld [vmem:[%s885_s10 + $0x108] sm:$0xff]  ;;  %258 = vst [vmem:[%s893_s11 + $0x78] sm:$0xff] %v257_v15 }
  0x18   : > { %260 = vst [vmem:[%s893_s11 + $0x80] sm:$0xff] %v259_v16  ;;  %262 = vst [vmem:[%s893_s11 + $0x88] sm:$0xff] %v261_v17  ;;  %v263_v18 = vld [vmem:[%s885_s10 + $0x120] sm:$0xff]  ;;  %v265_v19 = vld [vmem:[%s885_s10 + $0x128] sm:$0xff] }
  0x19   : > { %v267_v20 = vld [vmem:[%s885_s10 + $0x140] sm:$0xff]  ;;  %264 = vst [vmem:[%s893_s11 + $0x90] sm:$0xff] %v263_v18  ;;  %266 = vst [vmem:[%s893_s11 + $0x98] sm:$0xff] %v265_v19  ;;  %v269_v21 = vld [vmem:[%s885_s10 + $0x148] sm:$0xff] }
  0x1a   : > { %268 = vst [vmem:[%s893_s11 + $0xa0] sm:$0xff] %v267_v20  ;;  %v271_v22 = vld [vmem:[%s885_s10 + $0x160] sm:$0xff]  ;;  %v273_v23 = vld [vmem:[%s885_s10 + $0x168] sm:$0xff]  ;;  %270 = vst [vmem:[%s893_s11 + $0xa8] sm:$0xff] %v269_v21 }
  0x1b   : > { %272 = vst [vmem:[%s893_s11 + $0xb0] sm:$0xff] %v271_v22  ;;  %274 = vst [vmem:[%s893_s11 + $0xb8] sm:$0xff] %v273_v23  ;;  %v275_v24 = vld [vmem:[%s885_s10 + $0x180] sm:$0xff]  ;;  %v277_v25 = vld [vmem:[%s885_s10 + $0x188] sm:$0xff] }
  0x1c   : > { %v279_v26 = vld [vmem:[%s885_s10 + $0x1a0] sm:$0xff]  ;;  %276 = vst [vmem:[%s893_s11 + $0xc0] sm:$0xff] %v275_v24  ;;  %278 = vst [vmem:[%s893_s11 + $0xc8] sm:$0xff] %v277_v25  ;;  %v281_v27 = vld [vmem:[%s885_s10 + $0x1a8] sm:$0xff] }
  0x1d   : > { %280 = vst [vmem:[%s893_s11 + $0xd0] sm:$0xff] %v279_v26  ;;  %282 = vst [vmem:[%s893_s11 + $0xd8] sm:$0xff] %v281_v27 }
  0x1e PF: > { %p728_p5 = scmp.ge.s32.totalorder %s812_s23, 1  ;;  %p296_p6 = scmp.lt.s32.totalorder %s812_s23, 3 }
  0x20   : > { %p297_p7 = pnand %p728_p5, %p296_p6 }
  0x21   : > { %s303_s12 = sand.u32 (!%p297_p7), 1, %s804_s21   ;;  %s729_s16 = sshll.u32 (!%p297_p7), %s722_s24, 1 }
  0x22   : > { %300 = sbr.rel (%p297_p7) target bundleno = 510 (0x1fe), region = 63  ;;  %p339_p8 = scmp.lt.s32.totalorder (!%p297_p7), %s729_s16, 3 }
  0x23   : > { %s744_s13 = smul.u32 (!%p297_p7), 224, %s303_s12 }
  0x25   : > { %s959_s20 = scalar_lea.vmem (!%p297_p7), [#allocation2], %s744_s13 }
  0x27   : > { %v814_v28 = vmov 0.0   ;;  %v383_v29 = vld [vmem:[%s1033_s2 + $0x8] sm:$0xff]  ;;  %vm419_vm0 = vcmask 1043456   ;;  %v815_v30 = vmov 0   ;;  %v385_v31 = vld [vmem:[%s1033_s2 + $0x18] sm:$0xff]  ;;  %v382_v32 = vld [vmem:[%s1033_s2] sm:$0xff] }
  0x28   : > { %490 = vmatprep.mubr.f32.mxu0 %v814_v28  ;;  %630 = vmatprep.mubr.f32.mxu1 %v814_v28  ;;  %v381_v33 = vld [vmem:[%s959_s20 + $0xd8] sm:$0xf]  ;;  %v380_v34 = vld [vmem:[%s959_s20 + $0xd0] sm:$0xf]  ;;  %v379_v35 = vld [vmem:[%s959_s20 + $0xc8] sm:$0xff]  ;;  %vm406_vm1 = vcmask 883712  }
  0x29   : > { %772 = vset.pattern.permute.xlu1 %v815_v30  ;;  %771 = vset.pattern.permute.xlu0 %v815_v30  ;;  %v378_v36 = vld [vmem:[%s959_s20 + $0xc0] sm:$0xff]  ;;  %v384_v37 = vld [vmem:[%s1033_s2 + $0x10] sm:$0xff]  ;;  %v377_v38 = vld [vmem:[%s959_s20 + $0xb8] sm:$0xff]  ;;  %vm562_vm2 = vcmask 261120   ;;  %s1042_s16 = smov (!%p339_p8, %s729_s16), 3 }
  0x2a   : > { %393 = vperm.xlu1 %772, %v383_v29   ;;  %403 = vperm.xlu0 %771, %v385_v31   ;;  %v376_v39 = vld [vmem:[%s959_s20 + $0xb0] sm:$0xff]  ;;  %v375_v40 = vld [vmem:[%s959_s20 + $0xa8] sm:$0xff]  ;;  %v374_v41 = vld [vmem:[%s959_s20 + $0xa0] sm:$0xff]  ;;  %s730_s17 = sshll.u32 %s1042_s16, 2 }
  0x2b   : > { %733 = vmatprep.subr.msk.mxu0 %vm419_vm0, %v381_v33  ;;  %v556_v42 = vld [vmem:[%s1035_s4] sm:$0xf]  ;;  %v373_v43 = vld [vmem:[%s959_s20 + $0x98] sm:$0xff]  ;;  %v372_v44 = vld [vmem:[%s959_s20 + $0x90] sm:$0xff]  ;;  %s348_s23 = scalar_lea.vmem %s1037_s6, %s730_s17 }
  0x2c   : > { %734 = vmatpush1.msk.msra.mxu0 %vm419_vm0, %v380_v34  ;;  %v371_v45 = vld [vmem:[%s959_s20 + $0x88] sm:$0xff]  ;;  %v370_v46 = vld [vmem:[%s959_s20 + $0x80] sm:$0xff]  ;;  %v369_v47 = vld [vmem:[%s959_s20 + $0x78] sm:$0xff] }
  0x2d   : > { %432 = vmatprep.subr.mxu0 %v379_v35  ;;  %v368_v48 = vld [vmem:[%s959_s20 + $0x70] sm:$0xff]  ;;  %v367_v49 = vld [vmem:[%s959_s20 + $0x68] sm:$0xff]  ;;  %v366_v50 = vld [vmem:[%s959_s20 + $0x60] sm:$0xff] }
  0x2e   : > { %388 = vperm.xlu1 %772, %v382_v32   ;;  %433 = vmatpush1.msra.mxu0 %v378_v36  ;;  %v365_v51 = vld [vmem:[%s959_s20 + $0x58] sm:$0xff]  ;;  %v364_v52 = vld [vmem:[%s959_s20 + $0x50] sm:$0xff]  ;;  %v363_v53 = vld [vmem:[%s959_s20 + $0x48] sm:$0xff] }
  0x2f   : > { %398 = vperm.xlu0 %771, %v384_v37   ;;  %434 = vmatprep.subr.mxu0 %v377_v38  ;;  %v362_v54 = vld [vmem:[%s959_s20 + $0x40] sm:$0xff]  ;;  %v361_v55 = vld [vmem:[%s959_s20 + $0x38] sm:$0xff]  ;;  %v360_v56 = vld [vmem:[%s959_s20 + $0x30] sm:$0xff] }
  0x30   : > { %435 = vmatpush1.msra.mxu0 %v376_v39  ;;  %v359_v57 = vld [vmem:[%s959_s20 + $0x28] sm:$0xff]  ;;  %v358_v58 = vld [vmem:[%s959_s20 + $0x20] sm:$0xff]  ;;  %v357_v59 = vld [vmem:[%s959_s20 + $0x18] sm:$0xff] }
  0x31   : > { %436 = vmatprep.subr.mxu0 %v375_v40  ;;  %v356_v60 = vld [vmem:[%s959_s20 + $0x10] sm:$0xff]  ;;  %v355_v61 = vld [vmem:[%s959_s20 + $0x8] sm:$0xff]  ;;  %v354_v62 = vld [vmem:[%s959_s20] sm:$0xff]  ;;  %s342_s20 = scalar_lea.vmem %s1036_s5, %s730_s17 }
  0x32   : > { %437 = vmatpush1.msra.mxu0 %v374_v41  ;;  %v350_v63 = vld [vmem:[%s1032_s1] sm:$0xff]  ;;  %v351_v0 = vld [vmem:[%s1032_s1 + $0x8] sm:$0xff]  ;;  %v352_v1 = vld [vmem:[%s1032_s1 + $0x10] sm:$0xff] }
  0x33   : > { %559 = vperm.xlu0 %771, %v556_v42   ;;  %438 = vmatprep.subr.mxu0 %v373_v43  ;;  %v353_v2 = vld [vmem:[%s1032_s1 + $0x18] sm:$0xff] }
  0x34   : > { %439 = vmatpush1.msra.mxu0 %v372_v44 }
  0x35   : > { %440 = vmatprep.subr.mxu0 %v371_v45 }
  0x36   : > { %441 = vmatpush1.msra.mxu0 %v370_v46 }
  0x37   : > { %442 = vmatprep.subr.mxu0 %v369_v47 }
  0x38   : > { %443 = vmatpush1.msra.mxu0 %v368_v48 }
  0x39   : > { %444 = vmatprep.subr.mxu0 %v367_v49 }
  0x3a   : > { %445 = vmatpush1.msra.mxu0 %v366_v50 }
  0x3b   : > { %446 = vmatprep.subr.mxu0 %v365_v51 }
  0x3c   : > { %447 = vmatpush1.msra.mxu0 %v364_v52 }
  0x3d   : > { %448 = vmatprep.subr.mxu0 %v363_v53 }
  0x3e   : > { %449 = vmatpush1.msra.mxu0 %v362_v54 }
  0x3f   : > { %450 = vmatprep.subr.mxu0 %v361_v55 }
  0x40   : > { %451 = vmatpush1.msra.mxu0 %v360_v56 }
  0x41   : > { %452 = vmatprep.subr.mxu0 %v359_v57 }
  0x42   : > { %453 = vmatpush1.msra.mxu0 %v358_v58 }
  0x43   : > { %454 = vmatprep.subr.mxu0 %v357_v59 }
  0x44   : > { %455 = vmatpush1.msra.mxu0 %v356_v60 }
  0x45   : > { %456 = vmatprep.subr.mxu0 %v355_v61 }
  0x46   : > { %457 = vmatpush1.msra.mxu0 %v354_v62 }
  0x47   : > { %735 = vmatmul.mubr.msk.f32.vlgmr.msra.gmra.mxu0 %vm406_vm1, %v350_v63  ;;  %v555_v63 = vld [vmem:[%s1034_s3] sm:$0xf] }
  0x48   : > { %496 = vmatprep.mubr.f32.mxu0 %v814_v28 }
  0x4b   : > { %736 = vmatmul.mubr.msk.f32.gmra.mxu0 %vm406_vm1, %v351_v0  ;;  %v637_v0 = vld [vmem:[%s342_s20] sm:$0xff] }
  0x4c   : > { %502 = vmatprep.mubr.f32.mxu0 %v814_v28 }
  0x4f   : > { %737 = vmatmul.mubr.msk.f32.gmra.mxu0 %vm406_vm1, %v352_v1 }
  0x50   : > { %508 = vmatprep.mubr.f32.mxu0 %v814_v28 }
  0x53   : > { %738 = vmatmul.mubr.msk.f32.gmra.mxu0 %vm406_vm1, %v353_v2 }
  0xa5   : > { %v404_v4 = vpop.permute.xlu0 %403  ;;  %v394_v7 = vpop.permute.xlu1 %393 }
  0xa9   : > { %v389_v14 = vpop.permute.xlu1 %388 }
  0xaa   : > { %v399_v10 = vpop.permute.xlu0 %398 }
  0xae   : > { %v560_v1 = vpop.permute.xlu0 %559 }
 0x107   : > { %v492_v3 = vpop.f32.mrf.mxu0 }
 0x108   : > { %v493_v22 = vadd.f32 %v492_v3, %v389_v14 }
 0x109   : > { %v494_v5 = vpop.f32.mrf.mxu0 }
 0x10a   : > { %v495_v19 = vadd.f32 %v494_v5, %v389_v14  ;;  %v523_v30 = vmul.f32 0.70710677, %v493_v22  ;;  %v515_v59 = vmul.f32 0.5, %v493_v22 }
 0x10b   : > { %v498_v6 = vpop.f32.mrf.mxu0 }
 0x10c   : > { %v499_v17 = vadd.f32 %v498_v6, %v394_v7  ;;  %v524_v28 = vmul.f32 0.70710677, %v495_v19  ;;  %v516_v57 = vmul.f32 0.5, %v495_v19 }
 0x10d   : > { %v500_v8 = vpop.f32.mrf.mxu0 }
 0x10e   : > { %v501_v9 = vadd.f32 %v500_v8, %v394_v7  ;;  %v525_v27 = vmul.f32 0.70710677, %v499_v17  ;;  %v517_v54 = vmul.f32 0.5, %v499_v17 }
 0x10f   : > { %v504_v11 = vpop.f32.mrf.mxu0 }
 0x110   : > { %v505_v12 = vadd.f32 %v504_v11, %v399_v10  ;;  %v526_v15 = vmul.f32 0.70710677, %v501_v9  ;;  %v518_v51 = vmul.f32 0.5, %v501_v9 }
 0x111   : > { %v506_v13 = vpop.f32.mrf.mxu0 }
 0x112   : > { %v507_v16 = vadd.f32 %v506_v13, %v399_v10  ;;  %v527_v23 = vmul.f32 0.70710677, %v505_v12  ;;  %774 = verf.f32 %v526_v15  ;;  %v519_v48 = vmul.f32 0.5, %v505_v12 }
 0x113   : > { %v510_v18 = vpop.f32.mrf.mxu0 }
 0x114   : > { %v528_v20 = vmul.f32 0.70710677, %v507_v16  ;;  %v511_v21 = vadd.f32 %v510_v18, %v404_v4  ;;  %v520_v45 = vmul.f32 0.5, %v507_v16 }
 0x115   : > { %v512_v24 = vpop.f32.mrf.mxu0 }
 0x116   : > { %v529_v25 = vmul.f32 0.70710677, %v511_v21  ;;  %v513_v26 = vadd.f32 %v512_v24, %v404_v4  ;;  %776 = verf.f32 %v528_v20  ;;  %v521_v42 = vmul.f32 0.5, %v511_v21 }
 0x117   : > { %v639_v4 = vcombine.high %v637_v0, %v637_v0 }
 0x118   : > { %778 = verf.f32 %v529_v25  ;;  %v530_v29 = vmul.f32 0.70710677, %v513_v26  ;;  %v522_v38 = vmul.f32 0.5, %v513_v26 }
 0x119   : > { %780 = verf.f32 %v527_v23 }
 0x11a   : > { %782 = verf.f32 %v530_v29 }
 0x11b   : > { %784 = verf.f32 %v525_v27 }
 0x11c   : > { %786 = verf.f32 %v524_v28 }
 0x11d   : > { %788 = verf.f32 %v523_v30 }
 0x11f   : > { %v775_v31 = vpop.eup %774 }
 0x120   : > { %v542_v47 = vadd.f32 1.0, %v775_v31 }
 0x122   : > { %v550_v58 = vmul.f32 %v542_v47, %v518_v51 }
 0x123   : > { %v777_v32 = vpop.eup %776 }
 0x124   : > { %v544_v40 = vadd.f32 1.0, %v777_v32 }
 0x125   : > { %v779_v33 = vpop.eup %778 }
 0x126   : > { %v781_v34 = vpop.eup %780  ;;  %v545_v36 = vadd.f32 1.0, %v779_v33  ;;  %v552_v52 = vmul.f32 %v544_v40, %v520_v45 }
 0x127   : > { %v783_v35 = vpop.eup %782  ;;  %v543_v43 = vadd.f32 1.0, %v781_v34 }
 0x128   : > { %v785_v37 = vpop.eup %784  ;;  %v546_v39 = vadd.f32 1.0, %v783_v35  ;;  %v553_v49 = vmul.f32 %v545_v36, %v521_v42 }
 0x129   : > { %v787_v41 = vpop.eup %786  ;;  %v541_v50 = vadd.f32 1.0, %v785_v37  ;;  %v551_v55 = vmul.f32 %v543_v43, %v519_v48 }
 0x12a   : > { %v789_v44 = vpop.eup %788  ;;  %v554_v46 = vmul.f32 %v546_v39, %v522_v38  ;;  %v540_v53 = vadd.f32 1.0, %v787_v41 }
 0x12b   : > { %v539_v56 = vadd.f32 1.0, %v789_v44  ;;  %v549_v60 = vmul.f32 %v541_v50, %v517_v54 }
 0x12c   : > { %590 = vmatprep.subr.mxu1 %v554_v46  ;;  %v548_v61 = vmul.f32 %v540_v53, %v516_v57 }
 0x12d   : > { %591 = vmatpush1.msra.mxu1 %v553_v49  ;;  %v547_v62 = vmul.f32 %v539_v56, %v515_v59 }
 0x12e   : > { %592 = vmatprep.subr.mxu1 %v552_v52 }
 0x12f   : > { %593 = vmatpush1.msra.mxu1 %v551_v55 }
 0x130   : > { %594 = vmatprep.subr.mxu1 %v550_v58 }
 0x131   : > { %595 = vmatpush1.msra.mxu1 %v549_v60 }
 0x132   : > { %596 = vmatprep.subr.mxu1 %v548_v61 }
 0x133   : > { %597 = vmatpush1.msra.mxu1 %v547_v62 }
 0x134   : > { %739 = vmatmul.mubr.msk.f32.vlgmr.msra.gmra.mxu1 %vm562_vm2, %v555_v63 }
 0x1f4   : > { %v632_v2 = vpop.f32.mrf.mxu1 }
 0x1f5   : > { %v633_v3 = vadd.f32 %v632_v2, %v560_v1 }
 0x1f6   : > { %v634_v5 = vpop.f32.mrf.mxu1 }
 0x1f7   : > { %v635_v6 = vadd.f32 %v634_v5, %v560_v1  ;;  %v641_v7 = vadd.f32 %v637_v0, %v633_v3 }
 0x1f9   : > { %v642_v8 = vadd.f32 %v639_v4, %v635_v6 }
 0x1fb   : > { %v645_v9 = vcombine.low %v641_v7, %v642_v8 }
 0x1fd   : > { %647 = vst [vmem:[%s348_s23] sm:$0xff] %v645_v9 }
 0x1fe PF: > { %p13_p9 = scmp.ge.s32.totalorder %s868_s25, 4   ;;  %s1038_s21 = smov %s808_s22 }
 0x1ff   : > { %s1039_s22 = smov %s877_s28  ;;  %s1040_s23 = smov %s868_s25 }
 0x200   :  { %15 = sbr.rel (!%p13_p9) target bundleno = 2 (0x2), region = 105 }

</bundles_post_ra>
